<compile_context>
chip_gen: v6e
topology: v6e:2x2x1
jax: 0.10.0
libtpu: 0.0.40
codegen_flags: <defaults>
</compile_context>

<pallas_src>
import jax
import jax.numpy as jnp
import numpy as np
from jax.experimental import pallas as pl
from jax.experimental.pallas import tpu as pltpu

V = 512                           # synthetic vertex count (real SMPL: 6890 -> pad 6912)
TV = 256                          # vertex tile (lane axis); V % TV == 0
NUM_BETAS = 10
NUM_JOINTS = 24
POSE_FEAT = (NUM_JOINTS - 1) * 9  # 207
POSE_PAD = 256                    # pose-feature K padded to 2x128
JPAD = 128                        # joints lane-padded 24 -> 128 (aligned DMA + dense vst)

assert V % TV == 0 and TV % 128 == 0

SMPL_PARENTS = [-1, 0, 0, 0, 1, 2, 3, 4, 5, 6, 7, 8, 9, 9, 9,
                12, 13, 14, 16, 17, 18, 19, 20, 21]


# ----------------------------------------------------------------------------
# Pallas kernel 1: activation + shape blend + pose blend + joint regression
#   grid over vertex tiles; joints output is a resident accumulator
#   ("arbitrary" grid axis, init via pl.when on the first tile).
# ----------------------------------------------------------------------------
def _shape_kernel(beta_ref, pf_ref, vt_ref, sdx_ref, sdy_ref, sdz_ref,
                  pdx_ref, pdy_ref, pdz_ref, jregt_ref,
                  vposed_ref, joints_ref):
    # CustomActivation: 3 * tanh(beta)   (EUP; negligible, fused with the blends)
    betas = 3.0 * jnp.tanh(beta_ref[...])                       # [1, 10]
    pf = pf_ref[...]                                            # [1, 256] (zero-padded)

    sd_refs = (sdx_ref, sdy_ref, sdz_ref)
    pd_refs = (pdx_ref, pdy_ref, pdz_ref)
    vshaped_rows = []
    vposed_rows = []
    for c in range(3):                                          # static unroll x/y/z
        # shape blend shapes: [1,10] @ [10,TV] on the MXU
        s_off = jnp.dot(betas, sd_refs[c][...],
                        preferred_element_type=jnp.float32)     # [1, TV]
        vsh = vt_ref[c:c + 1, :] + s_off                        # [1, TV]  v_shaped row
        vshaped_rows.append(vsh)
        # pose blend shapes: [1,256] @ [256,TV] on the MXU
        p_off = jnp.dot(pf, pd_refs[c][...],
                        preferred_element_type=jnp.float32)     # [1, TV]
        vposed_rows.append(vsh + p_off)

    vposed_ref[...] = jnp.concatenate(vposed_rows, axis=0)      # [3, TV] lane-dense store

    # joint regression: [3,TV] @ [TV,128] (padded joints), accumulated over V tiles
    vshaped = jnp.concatenate(vshaped_rows, axis=0)             # [3, TV]
    jblock = jnp.dot(vshaped, jregt_ref[...],
                     preferred_element_type=jnp.float32)        # [3, 128]

    @pl.when(pl.program_id(0) == 0)
    def _():
        joints_ref[...] = jnp.zeros_like(joints_ref)

    joints_ref[...] += jblock


def shape_pose_blend(beta, pf_pad, vt, sdx, sdy, sdz, pdx, pdy, pdz, jreg_t):
    fixed = lambda i: (0, 0)
    vtile = lambda i: (0, i)
    return pl.pallas_call(
        _shape_kernel,
        out_shape=(jax.ShapeDtypeStruct((3, V), jnp.float32),
                   jax.ShapeDtypeStruct((3, JPAD), jnp.float32)),
        grid=(V // TV,),
        in_specs=[pl.BlockSpec((1, NUM_BETAS), fixed),
                  pl.BlockSpec((1, POSE_PAD), fixed),
                  pl.BlockSpec((3, TV), vtile),
                  pl.BlockSpec((NUM_BETAS, TV), vtile),
                  pl.BlockSpec((NUM_BETAS, TV), vtile),
                  pl.BlockSpec((NUM_BETAS, TV), vtile),
                  pl.BlockSpec((POSE_PAD, TV), vtile),
                  pl.BlockSpec((POSE_PAD, TV), vtile),
                  pl.BlockSpec((POSE_PAD, TV), vtile),
                  pl.BlockSpec((TV, JPAD), lambda i: (i, 0))],
        out_specs=(pl.BlockSpec((3, TV), vtile),
                   pl.BlockSpec((3, JPAD), fixed)),
        compiler_params=pltpu.CompilerParams(
            dimension_semantics=("arbitrary",)),       # joints accumulated over V tiles
    )(beta, pf_pad, vt, sdx, sdy, sdz, pdx, pdy, pdz, jreg_t)


# ----------------------------------------------------------------------------
# Pallas kernel 2: linear blend skinning with transposed transforms
#   T = A^T @ W^T -> [16, TV]; per-vertex scalars are sublane row slices.
# ----------------------------------------------------------------------------
def _skin_kernel(a_t_ref, lbswt_ref, vposed_ref, verts_ref):
    T = jnp.dot(a_t_ref[...], lbswt_ref[...],
                preferred_element_type=jnp.float32)             # [16, TV]
    px = vposed_ref[0:1, :]                                     # [1, TV]
    py = vposed_ref[1:2, :]
    pz = vposed_ref[2:3, :]
    rows = []
    for r in range(3):                                          # rows of the 3x4 transform
        rows.append(T[4 * r + 0:4 * r + 1, :] * px
                    + T[4 * r + 1:4 * r + 2, :] * py
                    + T[4 * r + 2:4 * r + 3, :] * pz
                    + T[4 * r + 3:4 * r + 4, :])
    verts_ref[...] = jnp.concatenate(rows, axis=0)              # [3, TV]


def skin(a_t, lbsw_t, vposed_3v):
    vtile = lambda i: (0, i)
    return pl.pallas_call(
        _skin_kernel,
        out_shape=jax.ShapeDtypeStruct((3, V), jnp.float32),
        grid=(V // TV,),
        in_specs=[pl.BlockSpec((16, NUM_JOINTS), lambda i: (0, 0)),
                  pl.BlockSpec((NUM_JOINTS, TV), vtile),
                  pl.BlockSpec((3, TV), vtile)],
        out_specs=pl.BlockSpec((3, TV), vtile),
        compiler_params=pltpu.CompilerParams(
            dimension_semantics=("parallel",)),        # vertex tiles independent
    )(a_t, lbsw_t, vposed_3v)


# ----------------------------------------------------------------------------
# Plain-JAX glue: Rodrigues + 24-joint kinematic chain (tiny, sequential)
# ----------------------------------------------------------------------------
def batch_rodrigues(rot_vecs):                                  # [N,3] -> [N,3,3]
    angle = jnp.linalg.norm(rot_vecs + 1e-8, axis=1, keepdims=True)   # [N,1]
    rot_dir = rot_vecs / angle
    cos = jnp.cos(angle)[:, :, None]
    sin = jnp.sin(angle)[:, :, None]
    rx, ry, rz = rot_dir[:, 0], rot_dir[:, 1], rot_dir[:, 2]
    zeros = jnp.zeros_like(rx)
    K = jnp.stack([zeros, -rz, ry,
                   rz, zeros, -rx,
                   -ry, rx, zeros], axis=1).reshape(-1, 3, 3)
    ident = jnp.eye(3, dtype=rot_vecs.dtype)[None]
    return ident + sin * K + (1.0 - cos) * jnp.matmul(K, K)


def batch_rigid_transform(rot_mats, joints):                    # [24,3,3], [24,3]
    parent_j = joints[np.array(SMPL_PARENTS[1:])]
    rel_joints = joints - jnp.concatenate(
        [jnp.zeros((1, 3), jnp.float32), parent_j], axis=0)
    tm = jnp.concatenate([rot_mats, rel_joints[:, :, None]], axis=2)  # [24,3,4]
    bottom = jnp.tile(jnp.array([[[0., 0., 0., 1.]]], jnp.float32),
                      (NUM_JOINTS, 1, 1))
    tm = jnp.concatenate([tm, bottom], axis=1)                        # [24,4,4]
    chain = [tm[0]]
    for i in range(1, NUM_JOINTS):
        chain.append(chain[SMPL_PARENTS[i]] @ tm[i])
    transforms = jnp.stack(chain, axis=0)                             # [24,4,4]
    posed_joints = transforms[:, :3, 3]
    joints_h = jnp.concatenate(
        [joints, jnp.zeros((NUM_JOINTS, 1), jnp.float32)], axis=1)
    corr = jnp.einsum('nij,nj->ni', transforms, joints_h)             # [24,4]
    rel_transforms = transforms.at[:, :, 3].add(-corr)
    return posed_joints, rel_transforms


def fit_shape_forward(beta, body_pose, p):
    # pose_feature depends only on body_pose -> compute before stage 1 so the
    # pose-blend contraction can be fused into kernel 1.
    full_pose = jnp.concatenate([jnp.zeros(3, jnp.float32),
                                 body_pose]).reshape(NUM_JOINTS, 3)
    rot_mats = batch_rodrigues(full_pose)                             # [24,3,3]
    pose_feature = (rot_mats[1:] - jnp.eye(3, dtype=jnp.float32)[None]
                    ).reshape(1, POSE_FEAT)
    pf_pad = jnp.concatenate(
        [pose_feature, jnp.zeros((1, POSE_PAD - POSE_FEAT), jnp.float32)], axis=1)

    # stage 1 (Pallas): activation + shape blend + pose blend + joint regression
    vposed_3v, joints_pad = shape_pose_blend(
        beta, pf_pad, p['vt'], p['sdx'], p['sdy'], p['sdz'],
        p['pdx'], p['pdy'], p['pdz'], p['jreg_t'])
    joints = joints_pad[:, :NUM_JOINTS].T                             # [24,3]

    # glue: kinematic chain
    posed_joints, rel_t = batch_rigid_transform(rot_mats, joints)
    a_t = rel_t.reshape(NUM_JOINTS, 16).T                             # [16,24]

    # stage 2 (Pallas): LBS skinning
    verts_3v = skin(a_t, p['lbsw_t'], vposed_3v)
    vertices = verts_3v.T[None]                                       # [1,V,3]
    return vertices, posed_joints[None]                               # [1,24,3]


# ----------------------------------------------------------------------------
# Pure-JAX reference (for a correctness check)
# ----------------------------------------------------------------------------
def reference_forward(beta, body_pose, raw):
    v_template, shapedirs, posedirs, j_regressor, lbs_weights = raw
    betas = (3.0 * jnp.tanh(beta))[0]                                 # [10]
    v_shaped = v_template + jnp.einsum('vcb,b->vc', shapedirs, betas)
    joints = j_regressor @ v_shaped
    full_pose = jnp.concatenate([jnp.zeros(3), body_pose]).reshape(NUM_JOINTS, 3)
    rot_mats = batch_rodrigues(full_pose)
    pose_feature = (rot_mats[1:] - jnp.eye(3)[None]).reshape(POSE_FEAT)
    posed_joints, rel_t = batch_rigid_transform(rot_mats, joints)
    v_posed = v_shaped + jnp.einsum('vck,k->vc', posedirs, pose_feature)
    T = (lbs_weights @ rel_t.reshape(NUM_JOINTS, 16)).reshape(V, 4, 4)
    vh = jnp.concatenate([v_posed, jnp.ones((V, 1))], axis=1)
    verts = jnp.einsum('vij,vj->vi', T, vh)[:, :3]
    return verts[None], posed_joints[None]


if __name__ == "__main__":
    key = jax.random.PRNGKey(0)
    k = jax.random.split(key, 8)

    # deterministic synthetic SMPL parameters
    v_template = jax.random.normal(k[0], (V, 3), jnp.float32) * 0.5
    shapedirs = jax.random.normal(k[1], (V, 3, NUM_BETAS), jnp.float32) * 0.01
    posedirs = jax.random.normal(k[2], (V, 3, POSE_FEAT), jnp.float32) * 0.001
    jreg_raw = jax.random.uniform(k[3], (NUM_JOINTS, V), jnp.float32)
    j_regressor = jreg_raw / jnp.sum(jreg_raw, axis=1, keepdims=True)
    lbsw_raw = jax.random.uniform(k[4], (V, NUM_JOINTS), jnp.float32)
    lbs_weights = lbsw_raw / jnp.sum(lbsw_raw, axis=1, keepdims=True)

    # Kernel-friendly constant layouts (host-side, one-time):
    #   vertex axis lane-dense; contraction dims on sublanes; K/joint dims padded.
    def pad_pd(pd_kv):      # [207, V] -> [256, V]
        return jnp.concatenate(
            [pd_kv, jnp.zeros((POSE_PAD - POSE_FEAT, V), jnp.float32)], axis=0)

    params = {
        'vt': v_template.T,                                 # [3, V]
        'sdx': shapedirs[:, 0, :].T,                        # [10, V]
        'sdy': shapedirs[:, 1, :].T,
        'sdz': shapedirs[:, 2, :].T,
        'pdx': pad_pd(posedirs[:, 0, :].T),                 # [256, V]
        'pdy': pad_pd(posedirs[:, 1, :].T),
        'pdz': pad_pd(posedirs[:, 2, :].T),
        'jreg_t': jnp.concatenate(                          # [V, 128]
            [j_regressor.T,
             jnp.zeros((V, JPAD - NUM_JOINTS), jnp.float32)], axis=1),
        'lbsw_t': lbs_weights.T,                            # [24, V]
    }

    # FitShape.__init__ sets beta = zeros([1,10]); perturb slightly (it is a
    # learnable parameter) so the tanh path is actually exercised.
    beta = jax.random.normal(k[5], (1, NUM_BETAS), jnp.float32) * 0.1
    body_pose = jnp.zeros((69,), jnp.float32).at[2].set(0.05).at[5].set(-0.05)

    fwd = jax.jit(fit_shape_forward)
    vertices, joints = fwd(beta, body_pose, params)
    jax.block_until_ready((vertices, joints))

    v_ref, j_ref = reference_forward(
        beta, body_pose, (v_template, shapedirs, posedirs, j_regressor, lbs_weights))
    assert vertices.shape == (1, V, 3) and joints.shape == (1, NUM_JOINTS, 3)
    np.testing.assert_allclose(np.asarray(vertices), np.asarray(v_ref),
                               atol=1e-4, rtol=1e-4)
    np.testing.assert_allclose(np.asarray(joints), np.asarray(j_ref),
                               atol=1e-4, rtol=1e-4)
    print("KERNEL_OK")
</pallas_src>

<mosaic_0001>
module attributes {stable_mosaic.version = 11 : i64} {
  func.func @_shape_kernel(%arg0: i32, %arg1: memref<1x10xf32, #tpu.memory_space<vmem>>, %arg2: memref<1x256xf32, #tpu.memory_space<vmem>>, %arg3: memref<3x256xf32, #tpu.memory_space<vmem>>, %arg4: memref<10x256xf32, #tpu.memory_space<vmem>>, %arg5: memref<10x256xf32, #tpu.memory_space<vmem>>, %arg6: memref<10x256xf32, #tpu.memory_space<vmem>>, %arg7: memref<256x256xf32, #tpu.memory_space<vmem>>, %arg8: memref<256x256xf32, #tpu.memory_space<vmem>>, %arg9: memref<256x256xf32, #tpu.memory_space<vmem>>, %arg10: memref<256x128xf32, #tpu.memory_space<vmem>>, %arg11: memref<3x256xf32, #tpu.memory_space<vmem>>, %arg12: memref<3x128xf32, #tpu.memory_space<vmem>>) attributes {dimension_semantics = [#tpu.dimension_semantics<arbitrary>], iteration_bounds = array<i64: 2>, scalar_prefetch = 0 : i64, scratch_operands = 0 : i64, tpu.core_type = #tpu.core_type<tc>, window_params = [{pipeline_mode = #tpu.pipeline_mode<synchronous>, transform_indices = @transform_0, window_bounds = array<i64: 1, 10>}, {pipeline_mode = #tpu.pipeline_mode<synchronous>, transform_indices = @transform_1, window_bounds = array<i64: 1, 256>}, {transform_indices = @transform_2, window_bounds = array<i64: 3, 256>}, {transform_indices = @transform_3, window_bounds = array<i64: 10, 256>}, {transform_indices = @transform_4, window_bounds = array<i64: 10, 256>}, {transform_indices = @transform_5, window_bounds = array<i64: 10, 256>}, {transform_indices = @transform_6, window_bounds = array<i64: 256, 256>}, {transform_indices = @transform_7, window_bounds = array<i64: 256, 256>}, {transform_indices = @transform_8, window_bounds = array<i64: 256, 256>}, {transform_indices = @transform_9, window_bounds = array<i64: 256, 128>}, {transform_indices = @transform_10, window_bounds = array<i64: 3, 256>}, {pipeline_mode = #tpu.pipeline_mode<synchronous>, transform_indices = @transform_11, window_bounds = array<i64: 3, 128>}]} {
    %c0 = arith.constant 0 : index
    %c0_0 = arith.constant 0 : index
    %0 = vector.load %arg1[%c0, %c0_0] : memref<1x10xf32, #tpu.memory_space<vmem>>, vector<1x10xf32>
    %1 = math.tanh %0 : vector<1x10xf32>
    %cst = arith.constant 3.000000e+00 : f32
    %2 = vector.broadcast %cst : f32 to vector<1x10xf32>
    %3 = arith.mulf %2, %1 : vector<1x10xf32>
    %c0_1 = arith.constant 0 : index
    %c0_2 = arith.constant 0 : index
    %4 = vector.load %arg2[%c0_1, %c0_2] : memref<1x256xf32, #tpu.memory_space<vmem>>, vector<1x256xf32>
    %c0_3 = arith.constant 0 : index
    %c0_4 = arith.constant 0 : index
    %5 = vector.load %arg4[%c0_3, %c0_4] : memref<10x256xf32, #tpu.memory_space<vmem>>, vector<10x256xf32>
    %cst_5 = arith.constant dense<0.000000e+00> : vector<1x256xf32>
    %6 = tpu.matmul %3, %5, %cst_5 {dimension_numbers = #tpu.dot_dimension_numbers<[1], [0], [0], [1], [0, 0, 1, 1], [], []>} : vector<1x10xf32>, vector<10x256xf32>, vector<1x256xf32> -> vector<1x256xf32>
    %c0_6 = arith.constant 0 : index
    %c0_7 = arith.constant 0 : index
    %7 = vector.load %arg3[%c0_6, %c0_7] : memref<3x256xf32, #tpu.memory_space<vmem>>, vector<1x256xf32>
    %8 = arith.addf %7, %6 : vector<1x256xf32>
    %c0_8 = arith.constant 0 : index
    %c0_9 = arith.constant 0 : index
    %9 = vector.load %arg7[%c0_8, %c0_9] : memref<256x256xf32, #tpu.memory_space<vmem>>, vector<256x256xf32>
    %cst_10 = arith.constant dense<0.000000e+00> : vector<1x256xf32>
    %10 = tpu.matmul %4, %9, %cst_10 {dimension_numbers = #tpu.dot_dimension_numbers<[1], [0], [0], [1], [0, 0, 1, 1], [], []>} : vector<1x256xf32>, vector<256x256xf32>, vector<1x256xf32> -> vector<1x256xf32>
    %11 = arith.addf %8, %10 : vector<1x256xf32>
    %c0_11 = arith.constant 0 : index
    %c0_12 = arith.constant 0 : index
    %12 = vector.load %arg5[%c0_11, %c0_12] : memref<10x256xf32, #tpu.memory_space<vmem>>, vector<10x256xf32>
    %cst_13 = arith.constant dense<0.000000e+00> : vector<1x256xf32>
    %13 = tpu.matmul %3, %12, %cst_13 {dimension_numbers = #tpu.dot_dimension_numbers<[1], [0], [0], [1], [0, 0, 1, 1], [], []>} : vector<1x10xf32>, vector<10x256xf32>, vector<1x256xf32> -> vector<1x256xf32>
    %c1 = arith.constant 1 : index
    %c0_14 = arith.constant 0 : index
    %14 = vector.load %arg3[%c1, %c0_14] : memref<3x256xf32, #tpu.memory_space<vmem>>, vector<1x256xf32>
    %15 = arith.addf %14, %13 : vector<1x256xf32>
    %c0_15 = arith.constant 0 : index
    %c0_16 = arith.constant 0 : index
    %16 = vector.load %arg8[%c0_15, %c0_16] : memref<256x256xf32, #tpu.memory_space<vmem>>, vector<256x256xf32>
    %cst_17 = arith.constant dense<0.000000e+00> : vector<1x256xf32>
    %17 = tpu.matmul %4, %16, %cst_17 {dimension_numbers = #tpu.dot_dimension_numbers<[1], [0], [0], [1], [0, 0, 1, 1], [], []>} : vector<1x256xf32>, vector<256x256xf32>, vector<1x256xf32> -> vector<1x256xf32>
    %18 = arith.addf %15, %17 : vector<1x256xf32>
    %c0_18 = arith.constant 0 : index
    %c0_19 = arith.constant 0 : index
    %19 = vector.load %arg6[%c0_18, %c0_19] : memref<10x256xf32, #tpu.memory_space<vmem>>, vector<10x256xf32>
    %cst_20 = arith.constant dense<0.000000e+00> : vector<1x256xf32>
    %20 = tpu.matmul %3, %19, %cst_20 {dimension_numbers = #tpu.dot_dimension_numbers<[1], [0], [0], [1], [0, 0, 1, 1], [], []>} : vector<1x10xf32>, vector<10x256xf32>, vector<1x256xf32> -> vector<1x256xf32>
    %c2 = arith.constant 2 : index
    %c0_21 = arith.constant 0 : index
    %21 = vector.load %arg3[%c2, %c0_21] : memref<3x256xf32, #tpu.memory_space<vmem>>, vector<1x256xf32>
    %22 = arith.addf %21, %20 : vector<1x256xf32>
    %c0_22 = arith.constant 0 : index
    %c0_23 = arith.constant 0 : index
    %23 = vector.load %arg9[%c0_22, %c0_23] : memref<256x256xf32, #tpu.memory_space<vmem>>, vector<256x256xf32>
    %cst_24 = arith.constant dense<0.000000e+00> : vector<1x256xf32>
    %24 = tpu.matmul %4, %23, %cst_24 {dimension_numbers = #tpu.dot_dimension_numbers<[1], [0], [0], [1], [0, 0, 1, 1], [], []>} : vector<1x256xf32>, vector<256x256xf32>, vector<1x256xf32> -> vector<1x256xf32>
    %25 = arith.addf %22, %24 : vector<1x256xf32>
    %26 = tpu.concatenate %11, %18, %25 in 0 : vector<1x256xf32>, vector<1x256xf32>, vector<1x256xf32> -> vector<3x256xf32>
    %c0_25 = arith.constant 0 : index
    %c0_26 = arith.constant 0 : index
    %27 = vector.load %arg11[%c0_25, %c0_26] : memref<3x256xf32, #tpu.memory_space<vmem>>, vector<3x256xf32>
    tpu.vector_store %arg11[%c0_25, %c0_26], %26 {strides = array<i32>} : memref<3x256xf32, #tpu.memory_space<vmem>>, vector<3x256xf32>,
    %28 = tpu.concatenate %8, %15, %22 in 0 : vector<1x256xf32>, vector<1x256xf32>, vector<1x256xf32> -> vector<3x256xf32>
    %c0_27 = arith.constant 0 : index
    %c0_28 = arith.constant 0 : index
    %29 = vector.load %arg10[%c0_27, %c0_28] : memref<256x128xf32, #tpu.memory_space<vmem>>, vector<256x128xf32>
    %cst_29 = arith.constant dense<0.000000e+00> : vector<3x128xf32>
    %30 = tpu.matmul %28, %29, %cst_29 {dimension_numbers = #tpu.dot_dimension_numbers<[1], [0], [0], [1], [0, 0, 1, 1], [], []>} : vector<3x256xf32>, vector<256x128xf32>, vector<3x128xf32> -> vector<3x128xf32>
    %c0_i32 = arith.constant 0 : i32
    %31 = arith.cmpi eq, %arg0, %c0_i32 : i32
    %32 = arith.extui %31 : i1 to i32
    %c0_i32_30 = arith.constant 0 : i32
    %33 = arith.cmpi ne, %32, %c0_i32_30 : i32
    scf.if %33 {
      %cst_35 = arith.constant 0.000000e+00 : f32
      %37 = vector.broadcast %cst_35 : f32 to vector<3x128xf32>
      %c0_36 = arith.constant 0 : index
      %c0_37 = arith.constant 0 : index
      %38 = vector.load %arg12[%c0_36, %c0_37] : memref<3x128xf32, #tpu.memory_space<vmem>>, vector<3x128xf32>
      tpu.vector_store %arg12[%c0_36, %c0_37], %37 {strides = array<i32>} : memref<3x128xf32, #tpu.memory_space<vmem>>, vector<3x128xf32>,
    } else {
    }
    %c0_31 = arith.constant 0 : index
    %c0_32 = arith.constant 0 : index
    %34 = vector.load %arg12[%c0_31, %c0_32] : memref<3x128xf32, #tpu.memory_space<vmem>>, vector<3x128xf32>
    %35 = arith.addf %34, %30 : vector<3x128xf32>
    %c0_33 = arith.constant 0 : index
    %c0_34 = arith.constant 0 : index
    %36 = vector.load %arg12[%c0_33, %c0_34] : memref<3x128xf32, #tpu.memory_space<vmem>>, vector<3x128xf32>
    tpu.vector_store %arg12[%c0_33, %c0_34], %35 {strides = array<i32>} : memref<3x128xf32, #tpu.memory_space<vmem>>, vector<3x128xf32>,
    return
  }
  func.func @transform_0(%arg0: i32) -> (i32, i32) {
    %c0_i32 = arith.constant 0 : i32
    %c0_i32_0 = arith.constant 0 : i32
    %c0_i32_1 = arith.constant 0 : i32
    return %c0_i32, %c0_i32_0 : i32, i32
  }
  func.func @transform_1(%arg0: i32) -> (i32, i32) {
    %c0_i32 = arith.constant 0 : i32
    %c0_i32_0 = arith.constant 0 : i32
    %c0_i32_1 = arith.constant 0 : i32
    return %c0_i32, %c0_i32_0 : i32, i32
  }
  func.func @transform_2(%arg0: i32) -> (i32, i32) {
    %c0_i32 = arith.constant 0 : i32
    %c0_i32_0 = arith.constant 0 : i32
    return %c0_i32, %arg0 : i32, i32
  }
  func.func @transform_3(%arg0: i32) -> (i32, i32) {
    %c0_i32 = arith.constant 0 : i32
    %c0_i32_0 = arith.constant 0 : i32
    return %c0_i32, %arg0 : i32, i32
  }
  func.func @transform_4(%arg0: i32) -> (i32, i32) {
    %c0_i32 = arith.constant 0 : i32
    %c0_i32_0 = arith.constant 0 : i32
    return %c0_i32, %arg0 : i32, i32
  }
  func.func @transform_5(%arg0: i32) -> (i32, i32) {
    %c0_i32 = arith.constant 0 : i32
    %c0_i32_0 = arith.constant 0 : i32
    return %c0_i32, %arg0 : i32, i32
  }
  func.func @transform_6(%arg0: i32) -> (i32, i32) {
    %c0_i32 = arith.constant 0 : i32
    %c0_i32_0 = arith.constant 0 : i32
    return %c0_i32, %arg0 : i32, i32
  }
  func.func @transform_7(%arg0: i32) -> (i32, i32) {
    %c0_i32 = arith.constant 0 : i32
    %c0_i32_0 = arith.constant 0 : i32
    return %c0_i32, %arg0 : i32, i32
  }
  func.func @transform_8(%arg0: i32) -> (i32, i32) {
    %c0_i32 = arith.constant 0 : i32
    %c0_i32_0 = arith.constant 0 : i32
    return %c0_i32, %arg0 : i32, i32
  }
  func.func @transform_9(%arg0: i32) -> (i32, i32) {
    %c0_i32 = arith.constant 0 : i32
    %c0_i32_0 = arith.constant 0 : i32
    return %arg0, %c0_i32 : i32, i32
  }
  func.func @transform_10(%arg0: i32) -> (i32, i32) {
    %c0_i32 = arith.constant 0 : i32
    %c0_i32_0 = arith.constant 0 : i32
    return %c0_i32, %arg0 : i32, i32
  }
  func.func @transform_11(%arg0: i32) -> (i32, i32) {
    %c0_i32 = arith.constant 0 : i32
    %c0_i32_0 = arith.constant 0 : i32
    %c0_i32_1 = arith.constant 0 : i32
    return %c0_i32, %c0_i32_0 : i32, i32
  }
}

module attributes {stable_mosaic.version = 11 : i64} {
  func.func @_skin_kernel(%arg0: i32, %arg1: memref<16x24xf32, #tpu.memory_space<vmem>>, %arg2: memref<24x256xf32, #tpu.memory_space<vmem>>, %arg3: memref<3x256xf32, #tpu.memory_space<vmem>>, %arg4: memref<3x256xf32, #tpu.memory_space<vmem>>) attributes {dimension_semantics = [#tpu.dimension_semantics<parallel>], iteration_bounds = array<i64: 2>, scalar_prefetch = 0 : i64, scratch_operands = 0 : i64, tpu.core_type = #tpu.core_type<tc>, window_params = [{pipeline_mode = #tpu.pipeline_mode<synchronous>, transform_indices = @transform_0, window_bounds = array<i64: 16, 24>}, {transform_indices = @transform_1, window_bounds = array<i64: 24, 256>}, {transform_indices = @transform_2, window_bounds = array<i64: 3, 256>}, {transform_indices = @transform_3, window_bounds = array<i64: 3, 256>}]} {
    %c0 = arith.constant 0 : index
    %c0_0 = arith.constant 0 : index
    %0 = vector.load %arg1[%c0, %c0_0] : memref<16x24xf32, #tpu.memory_space<vmem>>, vector<16x24xf32>
    %c0_1 = arith.constant 0 : index
    %c0_2 = arith.constant 0 : index
    %1 = vector.load %arg2[%c0_1, %c0_2] : memref<24x256xf32, #tpu.memory_space<vmem>>, vector<24x256xf32>
    %cst = arith.constant dense<0.000000e+00> : vector<16x256xf32>
    %2 = tpu.matmul %0, %1, %cst {dimension_numbers = #tpu.dot_dimension_numbers<[1], [0], [0], [1], [0, 0, 1, 1], [], []>} : vector<16x24xf32>, vector<24x256xf32>, vector<16x256xf32> -> vector<16x256xf32>
    %c0_3 = arith.constant 0 : index
    %c0_4 = arith.constant 0 : index
    %3 = vector.load %arg3[%c0_3, %c0_4] : memref<3x256xf32, #tpu.memory_space<vmem>>, vector<1x256xf32>
    %c1 = arith.constant 1 : index
    %c0_5 = arith.constant 0 : index
    %4 = vector.load %arg3[%c1, %c0_5] : memref<3x256xf32, #tpu.memory_space<vmem>>, vector<1x256xf32>
    %c2 = arith.constant 2 : index
    %c0_6 = arith.constant 0 : index
    %5 = vector.load %arg3[%c2, %c0_6] : memref<3x256xf32, #tpu.memory_space<vmem>>, vector<1x256xf32>
    %6 = vector.extract_strided_slice %2 {offsets = [0, 0], sizes = [1, 256], strides = [1, 1]} : vector<16x256xf32> to vector<1x256xf32>
    %7 = arith.mulf %6, %3 : vector<1x256xf32>
    %8 = vector.extract_strided_slice %2 {offsets = [1, 0], sizes = [1, 256], strides = [1, 1]} : vector<16x256xf32> to vector<1x256xf32>
    %9 = arith.mulf %8, %4 : vector<1x256xf32>
    %10 = arith.addf %7, %9 : vector<1x256xf32>
    %11 = vector.extract_strided_slice %2 {offsets = [2, 0], sizes = [1, 256], strides = [1, 1]} : vector<16x256xf32> to vector<1x256xf32>
    %12 = arith.mulf %11, %5 : vector<1x256xf32>
    %13 = arith.addf %10, %12 : vector<1x256xf32>
    %14 = vector.extract_strided_slice %2 {offsets = [3, 0], sizes = [1, 256], strides = [1, 1]} : vector<16x256xf32> to vector<1x256xf32>
    %15 = arith.addf %13, %14 : vector<1x256xf32>
    %16 = vector.extract_strided_slice %2 {offsets = [4, 0], sizes = [1, 256], strides = [1, 1]} : vector<16x256xf32> to vector<1x256xf32>
    %17 = arith.mulf %16, %3 : vector<1x256xf32>
    %18 = vector.extract_strided_slice %2 {offsets = [5, 0], sizes = [1, 256], strides = [1, 1]} : vector<16x256xf32> to vector<1x256xf32>
    %19 = arith.mulf %18, %4 : vector<1x256xf32>
    %20 = arith.addf %17, %19 : vector<1x256xf32>
    %21 = vector.extract_strided_slice %2 {offsets = [6, 0], sizes = [1, 256], strides = [1, 1]} : vector<16x256xf32> to vector<1x256xf32>
    %22 = arith.mulf %21, %5 : vector<1x256xf32>
    %23 = arith.addf %20, %22 : vector<1x256xf32>
    %24 = vector.extract_strided_slice %2 {offsets = [7, 0], sizes = [1, 256], strides = [1, 1]} : vector<16x256xf32> to vector<1x256xf32>
    %25 = arith.addf %23, %24 : vector<1x256xf32>
    %26 = vector.extract_strided_slice %2 {offsets = [8, 0], sizes = [1, 256], strides = [1, 1]} : vector<16x256xf32> to vector<1x256xf32>
    %27 = arith.mulf %26, %3 : vector<1x256xf32>
    %28 = vector.extract_strided_slice %2 {offsets = [9, 0], sizes = [1, 256], strides = [1, 1]} : vector<16x256xf32> to vector<1x256xf32>
    %29 = arith.mulf %28, %4 : vector<1x256xf32>
    %30 = arith.addf %27, %29 : vector<1x256xf32>
    %31 = vector.extract_strided_slice %2 {offsets = [10, 0], sizes = [1, 256], strides = [1, 1]} : vector<16x256xf32> to vector<1x256xf32>
    %32 = arith.mulf %31, %5 : vector<1x256xf32>
    %33 = arith.addf %30, %32 : vector<1x256xf32>
    %34 = vector.extract_strided_slice %2 {offsets = [11, 0], sizes = [1, 256], strides = [1, 1]} : vector<16x256xf32> to vector<1x256xf32>
    %35 = arith.addf %33, %34 : vector<1x256xf32>
    %36 = tpu.concatenate %15, %25, %35 in 0 : vector<1x256xf32>, vector<1x256xf32>, vector<1x256xf32> -> vector<3x256xf32>
    %c0_7 = arith.constant 0 : index
    %c0_8 = arith.constant 0 : index
    %37 = vector.load %arg4[%c0_7, %c0_8] : memref<3x256xf32, #tpu.memory_space<vmem>>, vector<3x256xf32>
    tpu.vector_store %arg4[%c0_7, %c0_8], %36 {strides = array<i32>} : memref<3x256xf32, #tpu.memory_space<vmem>>, vector<3x256xf32>,
    return
  }
  func.func @transform_0(%arg0: i32) -> (i32, i32) {
    %c0_i32 = arith.constant 0 : i32
    %c0_i32_0 = arith.constant 0 : i32
    %c0_i32_1 = arith.constant 0 : i32
    return %c0_i32, %c0_i32_0 : i32, i32
  }
  func.func @transform_1(%arg0: i32) -> (i32, i32) {
    %c0_i32 = arith.constant 0 : i32
    %c0_i32_0 = arith.constant 0 : i32
    return %c0_i32, %arg0 : i32, i32
  }
  func.func @transform_2(%arg0: i32) -> (i32, i32) {
    %c0_i32 = arith.constant 0 : i32
    %c0_i32_0 = arith.constant 0 : i32
    return %c0_i32, %arg0 : i32, i32
  }
  func.func @transform_3(%arg0: i32) -> (i32, i32) {
    %c0_i32 = arith.constant 0 : i32
    %c0_i32_0 = arith.constant 0 : i32
    return %c0_i32, %arg0 : i32, i32
  }
}

</mosaic_0001>

<bundles_post_ra>
// kernel: fit_shape_forward.2
= control target key start
LH: loop header
LB: loop body
LE: loop exit
PB: predicated region body
PF: predicated region fallthrough
CT: control target
= control target key end

     0   :  { %s3006_s0 = inlined_call_operand.vmem [shape: f32[1,10], index: 0, kind: input, shape index: {}]   ;;  %s3007_s1 = inlined_call_operand.vmem [shape: f32[1,256], index: 1, kind: input, shape index: {}]   ;;  %s3008_s2 = inlined_call_operand.vmem [shape: f32[3,512], index: 2, kind: input, shape index: {}]   ;;  %s3009_s3 = inlined_call_operand.vmem [shape: f32[10,512], index: 3, kind: input, shape index: {}]   ;;  %s3010_s4 = inlined_call_operand.vmem [shape: f32[10,512], index: 4, kind: input, shape index: {}]   ;;  %s3011_s5 = inlined_call_operand.vmem [shape: f32[10,512], index: 5, kind: input, shape index: {}]   ;;  %s3012_s6 = inlined_call_operand.vmem [shape: f32[256,512], index: 6, kind: input, shape index: {}]   ;;  %s3013_s7 = inlined_call_operand.hbm [shape: f32[256,512], index: 7, kind: input, shape index: {}]   ;;  %s3014_s8 = inlined_call_operand.hbm [shape: f32[256,512], index: 8, kind: input, shape index: {}]   ;;  %s3015_s9 = inlined_call_operand.hbm [shape: f32[512,128], index: 9, kind: input, shape index: {}]   ;;  %s3016_s10 = inlined_call_operand.vmem [shape: f32[3,512], index: 10, kind: output, shape index: {0}]   ;;  %s3017_s11 = inlined_call_operand.vmem [shape: f32[3,128], index: 11, kind: output, shape index: {1}]  }
   0x1   :  { %3019 = sst [smem:[#allocation14_spill]] %s3009_s3 }
   0x2   :  { %3020 = sst [smem:[#allocation15_spill]] %s3010_s4 }
   0x3   :  { %3021 = sst [smem:[#allocation16_spill]] %s3011_s5 }
   0x4   :  { %3022 = sst [smem:[#allocation17_spill]] %s3012_s6 }
   0x5   :  { %3023 = sst [smem:[#allocation18_spill]] %s3014_s8 }
   0x6   :  { %17 = vsyncpa [#allocation7], 0 }
   0x7   :  { %19 = vsyncpa [#allocation7 + $0x1], 0 }
   0x8   :  { %20 = vsyncpa [#allocation9], 0 }
   0x9   :  { %22 = vsyncpa [#allocation9 + $0x1], 0  ;;  %s2323_s17 = smov 0   ;;  %s2325_s18 = smov 0  }
   0xa   :  { %s2327_s19 = smov 0   ;;  %s2329_s20 = smov 0  }
   0xb LB: > { %s2342_s21 = sadd.s32 4294967295, %s2250_s20   ;;  %s2345_s22 = sadd.s32 1, %s2250_s20   ;;  %s2250_s20 = sphi %s2329_s20, %s3037_s20   ;;  %s2246_s19 = sphi %s2327_s19, %s3036_s19   ;;  %s2242_s18 = sphi %s2325_s18, %s3035_s18   ;;  %s2238_s17 = sphi %s2323_s17, %s3034_s17  }
   0xc   : > { %s100_s23 = ssub.s32 %s2250_s20, %s2345_s22  ;;  %s103_s24 = sadd.s32 1, %s2246_s19 }
   0xd   : > { %p101_p0 = scmp.eq.s32.totalorder %s100_s23, 0  ;;  %p110_p1 = scmp.ne.s32.totalorder %s2246_s19, %s2242_s18 }
   0xe   : > { %p111_p2 = scmp.eq.s32.totalorder %s2250_s20, 0  ;;  %p220_p3 = scmp.ne.s32.totalorder %s2242_s18, %s2238_s17 }
   0xf   : > { %s2355_s25 = scalar_select %p101_p0, %s2246_s19, %s103_s24  }
  0x10   : > { %p2357_p4 = por %p111_p2, %p110_p1  ;;  %p221_p5 = scmp.eq.s32.totalorder %s2342_s21, 0 }
  0x11   : > { %3024 = sst [smem:[#allocation13_spill]] %s2355_s25  ;;  %p1996_p7 = scmp.ge.s32.totalorder %s2250_s20, 2 }
  0x12   : > { %p2362_p6 = por %p221_p5, %p220_p3 }
  0x13   : > { %345 = sbr.rel (%p1996_p7) target bundleno = 181 (0xb5), region = 24 }
  0x18   : > { %357 = sbr.rel (!%p2357_p4) target bundleno = 36 (0x24), region = 32  ;;  %s359_s28 = sand.u32 (%p2357_p4), 1, %s2246_s19  }
  0x19   : > { %s2044_s29 = sshll.u32 (%p2357_p4), %s2250_s20, 4  ;;  %s1997_s30 = sshll.u32 (%p2357_p4), %s359_s28, 5 }
  0x1a   : > { %s3027_s3 = sld [smem:[#allocation14_spill]] (%p2357_p4)  ;;  %s361_s15 = scalar_lea.vmem (%p2357_p4), [#allocation2], %s1997_s30 }
  0x20   : > { %s364_s14 = scalar_lea.vmem %s3027_s3, %s2044_s29 }
  0x21   : > { %v377_v0 = vld [vmem:[%s364_s14] sm:$0xff]  ;;  %v379_v1 = vld [vmem:[%s364_s14 + $0x8] sm:$0xff] }
  0x22   : > { %v381_v2 = vld [vmem:[%s364_s14 + $0x20] sm:$0xff]  ;;  %378 = vst [vmem:[%s361_s15] sm:$0xff] %v377_v0  ;;  %380 = vst [vmem:[%s361_s15 + $0x8] sm:$0xff] %v379_v1  ;;  %v383_v3 = vld [vmem:[%s364_s14 + $0x28] sm:$0xff] }
  0x23   : > { %382 = vst [vmem:[%s361_s15 + $0x10] sm:$0xff] %v381_v2  ;;  %384 = vst [vmem:[%s361_s15 + $0x18] sm:$0xff] %v383_v3 }
  0x24 PF: > { %390 = sbr.rel (!%p2357_p4) target bundleno = 48 (0x30), region = 55  ;;  %s392_s16 = sand.u32 (%p2357_p4), 1, %s2246_s19  }
  0x25   : > { %s2045_s17 = sshll.u32 (%p2357_p4), %s2250_s20, 4  ;;  %s2000_s23 = sshll.u32 (%p2357_p4), %s392_s16, 5 }
  0x26   : > { %s3028_s4 = sld [smem:[#allocation15_spill]] (%p2357_p4)  ;;  %s394_s30 = scalar_lea.vmem (%p2357_p4), [#allocation3], %s2000_s23 }
  0x2c   : > { %s397_s29 = scalar_lea.vmem %s3028_s4, %s2045_s17 }
  0x2d   : > { %v410_v4 = vld [vmem:[%s397_s29] sm:$0xff]  ;;  %v412_v5 = vld [vmem:[%s397_s29 + $0x8] sm:$0xff] }
  0x2e   : > { %v414_v6 = vld [vmem:[%s397_s29 + $0x20] sm:$0xff]  ;;  %411 = vst [vmem:[%s394_s30] sm:$0xff] %v410_v4  ;;  %413 = vst [vmem:[%s394_s30 + $0x8] sm:$0xff] %v412_v5  ;;  %v416_v7 = vld [vmem:[%s397_s29 + $0x28] sm:$0xff] }
  0x2f   : > { %415 = vst [vmem:[%s394_s30 + $0x10] sm:$0xff] %v414_v6  ;;  %417 = vst [vmem:[%s394_s30 + $0x18] sm:$0xff] %v416_v7 }
  0x30 PF: > { %423 = sbr.rel (!%p2357_p4) target bundleno = 60 (0x3c), region = 78  ;;  %s425_s12 = sand.u32 (%p2357_p4), 1, %s2246_s19  }
  0x31   : > { %s2046_s13 = sshll.u32 (%p2357_p4), %s2250_s20, 4  ;;  %s2003_s14 = sshll.u32 (%p2357_p4), %s425_s12, 5 }
  0x32   : > { %s3029_s5 = sld [smem:[#allocation16_spill]] (%p2357_p4)  ;;  %s427_s23 = scalar_lea.vmem (%p2357_p4), [#allocation4], %s2003_s14 }
  0x38   : > { %s430_s17 = scalar_lea.vmem %s3029_s5, %s2046_s13 }
  0x39   : > { %v443_v8 = vld [vmem:[%s430_s17] sm:$0xff]  ;;  %v445_v9 = vld [vmem:[%s430_s17 + $0x8] sm:$0xff] }
  0x3a   : > { %v447_v10 = vld [vmem:[%s430_s17 + $0x20] sm:$0xff]  ;;  %444 = vst [vmem:[%s427_s23] sm:$0xff] %v443_v8  ;;  %446 = vst [vmem:[%s427_s23 + $0x8] sm:$0xff] %v445_v9  ;;  %v449_v11 = vld [vmem:[%s430_s17 + $0x28] sm:$0xff] }
  0x3b   : > { %448 = vst [vmem:[%s427_s23 + $0x10] sm:$0xff] %v447_v10  ;;  %450 = vst [vmem:[%s427_s23 + $0x18] sm:$0xff] %v449_v11 }
  0x3c PF: > { %456 = sbr.rel (!%p2357_p4) target bundleno = 102 (0x66), region = 101  ;;  %s458_s24 = sand.u32 (%p2357_p4), 1, %s2246_s19  }
  0x3d   : > { %s2047_s28 = sshll.u32 (%p2357_p4), %s2250_s20, 4  ;;  %s2006_s29 = sshll.u32 (%p2357_p4), %s458_s24, 9 }
  0x3e   : > { %s3030_s6 = sld [smem:[#allocation17_spill]] (%p2357_p4)  ;;  %s2400_s14 = scalar_lea.vmem (%p2357_p4), [#allocation5], %s2006_s29 }
  0x44   : > { %s2395_s13 = scalar_lea.vmem %s3030_s6, %s2047_s28 }
  0x45   : > { %v476_v12 = vld [vmem:[%s2395_s13] sm:$0xff]  ;;  %v478_v13 = vld [vmem:[%s2395_s13 + $0x8] sm:$0xff] }
  0x46   : > { %v480_v14 = vld [vmem:[%s2395_s13 + $0x20] sm:$0xff]  ;;  %477 = vst [vmem:[%s2400_s14] sm:$0xff] %v476_v12  ;;  %479 = vst [vmem:[%s2400_s14 + $0x8] sm:$0xff] %v478_v13  ;;  %v482_v15 = vld [vmem:[%s2395_s13 + $0x28] sm:$0xff] }
  0x47   : > { %481 = vst [vmem:[%s2400_s14 + $0x10] sm:$0xff] %v480_v14  ;;  %v484_v16 = vld [vmem:[%s2395_s13 + $0x40] sm:$0xff]  ;;  %v486_v17 = vld [vmem:[%s2395_s13 + $0x48] sm:$0xff]  ;;  %483 = vst [vmem:[%s2400_s14 + $0x18] sm:$0xff] %v482_v15 }
  0x48   : > { %485 = vst [vmem:[%s2400_s14 + $0x20] sm:$0xff] %v484_v16  ;;  %487 = vst [vmem:[%s2400_s14 + $0x28] sm:$0xff] %v486_v17  ;;  %v488_v18 = vld [vmem:[%s2395_s13 + $0x60] sm:$0xff]  ;;  %v490_v19 = vld [vmem:[%s2395_s13 + $0x68] sm:$0xff] }
  0x49   : > { %v492_v20 = vld [vmem:[%s2395_s13 + $0x80] sm:$0xff]  ;;  %489 = vst [vmem:[%s2400_s14 + $0x30] sm:$0xff] %v488_v18  ;;  %491 = vst [vmem:[%s2400_s14 + $0x38] sm:$0xff] %v490_v19  ;;  %v494_v21 = vld [vmem:[%s2395_s13 + $0x88] sm:$0xff] }
  0x4a   : > { %493 = vst [vmem:[%s2400_s14 + $0x40] sm:$0xff] %v492_v20  ;;  %v496_v22 = vld [vmem:[%s2395_s13 + $0xa0] sm:$0xff]  ;;  %v498_v23 = vld [vmem:[%s2395_s13 + $0xa8] sm:$0xff]  ;;  %495 = vst [vmem:[%s2400_s14 + $0x48] sm:$0xff] %v494_v21 }
  0x4b   : > { %497 = vst [vmem:[%s2400_s14 + $0x50] sm:$0xff] %v496_v22  ;;  %499 = vst [vmem:[%s2400_s14 + $0x58] sm:$0xff] %v498_v23  ;;  %v500_v24 = vld [vmem:[%s2395_s13 + $0xc0] sm:$0xff]  ;;  %v502_v25 = vld [vmem:[%s2395_s13 + $0xc8] sm:$0xff] }
  0x4c   : > { %v504_v26 = vld [vmem:[%s2395_s13 + $0xe0] sm:$0xff]  ;;  %501 = vst [vmem:[%s2400_s14 + $0x60] sm:$0xff] %v500_v24  ;;  %503 = vst [vmem:[%s2400_s14 + $0x68] sm:$0xff] %v502_v25  ;;  %v506_v27 = vld [vmem:[%s2395_s13 + $0xe8] sm:$0xff] }
  0x4d   : > { %505 = vst [vmem:[%s2400_s14 + $0x70] sm:$0xff] %v504_v26  ;;  %v508_v28 = vld [vmem:[%s2395_s13 + $0x100] sm:$0xff]  ;;  %v510_v29 = vld [vmem:[%s2395_s13 + $0x108] sm:$0xff]  ;;  %507 = vst [vmem:[%s2400_s14 + $0x78] sm:$0xff] %v506_v27 }
  0x4e   : > { %509 = vst [vmem:[%s2400_s14 + $0x80] sm:$0xff] %v508_v28  ;;  %511 = vst [vmem:[%s2400_s14 + $0x88] sm:$0xff] %v510_v29  ;;  %v512_v30 = vld [vmem:[%s2395_s13 + $0x120] sm:$0xff]  ;;  %v514_v31 = vld [vmem:[%s2395_s13 + $0x128] sm:$0xff] }
  0x4f   : > { %v516_v32 = vld [vmem:[%s2395_s13 + $0x140] sm:$0xff]  ;;  %513 = vst [vmem:[%s2400_s14 + $0x90] sm:$0xff] %v512_v30  ;;  %515 = vst [vmem:[%s2400_s14 + $0x98] sm:$0xff] %v514_v31  ;;  %v518_v33 = vld [vmem:[%s2395_s13 + $0x148] sm:$0xff] }
  0x50   : > { %517 = vst [vmem:[%s2400_s14 + $0xa0] sm:$0xff] %v516_v32  ;;  %v520_v34 = vld [vmem:[%s2395_s13 + $0x160] sm:$0xff]  ;;  %v522_v35 = vld [vmem:[%s2395_s13 + $0x168] sm:$0xff]  ;;  %519 = vst [vmem:[%s2400_s14 + $0xa8] sm:$0xff] %v518_v33 }
  0x51   : > { %521 = vst [vmem:[%s2400_s14 + $0xb0] sm:$0xff] %v520_v34  ;;  %523 = vst [vmem:[%s2400_s14 + $0xb8] sm:$0xff] %v522_v35  ;;  %v524_v36 = vld [vmem:[%s2395_s13 + $0x180] sm:$0xff]  ;;  %v526_v37 = vld [vmem:[%s2395_s13 + $0x188] sm:$0xff] }
  0x52   : > { %v528_v38 = vld [vmem:[%s2395_s13 + $0x1a0] sm:$0xff]  ;;  %525 = vst [vmem:[%s2400_s14 + $0xc0] sm:$0xff] %v524_v36  ;;  %527 = vst [vmem:[%s2400_s14 + $0xc8] sm:$0xff] %v526_v37  ;;  %v530_v39 = vld [vmem:[%s2395_s13 + $0x1a8] sm:$0xff] }
  0x53   : > { %529 = vst [vmem:[%s2400_s14 + $0xd0] sm:$0xff] %v528_v38  ;;  %v532_v40 = vld [vmem:[%s2395_s13 + $0x1c0] sm:$0xff]  ;;  %v534_v41 = vld [vmem:[%s2395_s13 + $0x1c8] sm:$0xff]  ;;  %531 = vst [vmem:[%s2400_s14 + $0xd8] sm:$0xff] %v530_v39 }
  0x54   : > { %533 = vst [vmem:[%s2400_s14 + $0xe0] sm:$0xff] %v532_v40  ;;  %535 = vst [vmem:[%s2400_s14 + $0xe8] sm:$0xff] %v534_v41  ;;  %v536_v42 = vld [vmem:[%s2395_s13 + $0x1e0] sm:$0xff]  ;;  %v538_v43 = vld [vmem:[%s2395_s13 + $0x1e8] sm:$0xff] }
  0x55   : > { %v540_v44 = vld [vmem:[%s2395_s13 + $0x200] sm:$0xff]  ;;  %537 = vst [vmem:[%s2400_s14 + $0xf0] sm:$0xff] %v536_v42  ;;  %539 = vst [vmem:[%s2400_s14 + $0xf8] sm:$0xff] %v538_v43  ;;  %v542_v45 = vld [vmem:[%s2395_s13 + $0x208] sm:$0xff] }
  0x56   : > { %541 = vst [vmem:[%s2400_s14 + $0x100] sm:$0xff] %v540_v44  ;;  %v544_v46 = vld [vmem:[%s2395_s13 + $0x220] sm:$0xff]  ;;  %v546_v47 = vld [vmem:[%s2395_s13 + $0x228] sm:$0xff]  ;;  %543 = vst [vmem:[%s2400_s14 + $0x108] sm:$0xff] %v542_v45 }
  0x57   : > { %545 = vst [vmem:[%s2400_s14 + $0x110] sm:$0xff] %v544_v46  ;;  %547 = vst [vmem:[%s2400_s14 + $0x118] sm:$0xff] %v546_v47  ;;  %v548_v48 = vld [vmem:[%s2395_s13 + $0x240] sm:$0xff]  ;;  %v550_v49 = vld [vmem:[%s2395_s13 + $0x248] sm:$0xff] }
  0x58   : > { %v552_v50 = vld [vmem:[%s2395_s13 + $0x260] sm:$0xff]  ;;  %549 = vst [vmem:[%s2400_s14 + $0x120] sm:$0xff] %v548_v48  ;;  %551 = vst [vmem:[%s2400_s14 + $0x128] sm:$0xff] %v550_v49  ;;  %v554_v51 = vld [vmem:[%s2395_s13 + $0x268] sm:$0xff] }
  0x59   : > { %553 = vst [vmem:[%s2400_s14 + $0x130] sm:$0xff] %v552_v50  ;;  %v556_v52 = vld [vmem:[%s2395_s13 + $0x280] sm:$0xff]  ;;  %v558_v53 = vld [vmem:[%s2395_s13 + $0x288] sm:$0xff]  ;;  %555 = vst [vmem:[%s2400_s14 + $0x138] sm:$0xff] %v554_v51 }
  0x5a   : > { %557 = vst [vmem:[%s2400_s14 + $0x140] sm:$0xff] %v556_v52  ;;  %559 = vst [vmem:[%s2400_s14 + $0x148] sm:$0xff] %v558_v53  ;;  %v560_v54 = vld [vmem:[%s2395_s13 + $0x2a0] sm:$0xff]  ;;  %v562_v55 = vld [vmem:[%s2395_s13 + $0x2a8] sm:$0xff] }
  0x5b   : > { %v564_v56 = vld [vmem:[%s2395_s13 + $0x2c0] sm:$0xff]  ;;  %561 = vst [vmem:[%s2400_s14 + $0x150] sm:$0xff] %v560_v54  ;;  %563 = vst [vmem:[%s2400_s14 + $0x158] sm:$0xff] %v562_v55  ;;  %v566_v57 = vld [vmem:[%s2395_s13 + $0x2c8] sm:$0xff] }
  0x5c   : > { %565 = vst [vmem:[%s2400_s14 + $0x160] sm:$0xff] %v564_v56  ;;  %v568_v58 = vld [vmem:[%s2395_s13 + $0x2e0] sm:$0xff]  ;;  %v570_v59 = vld [vmem:[%s2395_s13 + $0x2e8] sm:$0xff]  ;;  %567 = vst [vmem:[%s2400_s14 + $0x168] sm:$0xff] %v566_v57 }
  0x5d   : > { %569 = vst [vmem:[%s2400_s14 + $0x170] sm:$0xff] %v568_v58  ;;  %571 = vst [vmem:[%s2400_s14 + $0x178] sm:$0xff] %v570_v59  ;;  %v572_v60 = vld [vmem:[%s2395_s13 + $0x300] sm:$0xff]  ;;  %v574_v61 = vld [vmem:[%s2395_s13 + $0x308] sm:$0xff] }
  0x5e   : > { %v576_v62 = vld [vmem:[%s2395_s13 + $0x320] sm:$0xff]  ;;  %573 = vst [vmem:[%s2400_s14 + $0x180] sm:$0xff] %v572_v60  ;;  %575 = vst [vmem:[%s2400_s14 + $0x188] sm:$0xff] %v574_v61  ;;  %v578_v63 = vld [vmem:[%s2395_s13 + $0x328] sm:$0xff] }
  0x5f   : > { %577 = vst [vmem:[%s2400_s14 + $0x190] sm:$0xff] %v576_v62  ;;  %v580_v0 = vld [vmem:[%s2395_s13 + $0x340] sm:$0xff]  ;;  %v582_v1 = vld [vmem:[%s2395_s13 + $0x348] sm:$0xff]  ;;  %579 = vst [vmem:[%s2400_s14 + $0x198] sm:$0xff] %v578_v63 }
  0x60   : > { %581 = vst [vmem:[%s2400_s14 + $0x1a0] sm:$0xff] %v580_v0  ;;  %583 = vst [vmem:[%s2400_s14 + $0x1a8] sm:$0xff] %v582_v1  ;;  %v584_v2 = vld [vmem:[%s2395_s13 + $0x360] sm:$0xff]  ;;  %v586_v3 = vld [vmem:[%s2395_s13 + $0x368] sm:$0xff] }
  0x61   : > { %v588_v4 = vld [vmem:[%s2395_s13 + $0x380] sm:$0xff]  ;;  %585 = vst [vmem:[%s2400_s14 + $0x1b0] sm:$0xff] %v584_v2  ;;  %587 = vst [vmem:[%s2400_s14 + $0x1b8] sm:$0xff] %v586_v3  ;;  %v590_v5 = vld [vmem:[%s2395_s13 + $0x388] sm:$0xff] }
  0x62   : > { %589 = vst [vmem:[%s2400_s14 + $0x1c0] sm:$0xff] %v588_v4  ;;  %v592_v6 = vld [vmem:[%s2395_s13 + $0x3a0] sm:$0xff]  ;;  %v594_v7 = vld [vmem:[%s2395_s13 + $0x3a8] sm:$0xff]  ;;  %591 = vst [vmem:[%s2400_s14 + $0x1c8] sm:$0xff] %v590_v5 }
  0x63   : > { %593 = vst [vmem:[%s2400_s14 + $0x1d0] sm:$0xff] %v592_v6  ;;  %595 = vst [vmem:[%s2400_s14 + $0x1d8] sm:$0xff] %v594_v7  ;;  %v596_v8 = vld [vmem:[%s2395_s13 + $0x3c0] sm:$0xff]  ;;  %v598_v9 = vld [vmem:[%s2395_s13 + $0x3c8] sm:$0xff] }
  0x64   : > { %v600_v10 = vld [vmem:[%s2395_s13 + $0x3e0] sm:$0xff]  ;;  %597 = vst [vmem:[%s2400_s14 + $0x1e0] sm:$0xff] %v596_v8  ;;  %599 = vst [vmem:[%s2400_s14 + $0x1e8] sm:$0xff] %v598_v9  ;;  %v602_v11 = vld [vmem:[%s2395_s13 + $0x3e8] sm:$0xff] }
  0x65   : > { %601 = vst [vmem:[%s2400_s14 + $0x1f0] sm:$0xff] %v600_v10  ;;  %603 = vst [vmem:[%s2400_s14 + $0x1f8] sm:$0xff] %v602_v11 }
  0x66 PF: > { %s2528_s15 = sand.u32 1, %s2246_s19   ;;  %s3018_s16 = sshll.u32 %s2250_s20, 8 }
  0x67   : > { %s2009_s17 = sshll.u32 %s2528_s15, 9  ;;  %s631_s23 = sand.u32 1, %s2250_s20  }
  0x68   : > { %s3031_s8 = sld [smem:[#allocation18_spill]]  ;;  %s635_s30 = scalar_lea.vmem [#allocation8], %s2009_s17 }
  0x69   : > { %s642_s12 = sshll.u32 %s635_s30, 4  ;;  %s2544_s13 = scalar_lea.sflag [#allocation9], %s631_s23  ;;  %s2542_s12 = int_to_ptr.vmem [resolvable:$true] %s642_s12 }
  0x6e   : > { %s2538_s29 = scalar_lea.hbm %s3031_s8, %s3018_s16  ;;  %s2138_s24 = scalar_lea.hbm %s3031_s8, 16384 }
  0x6f   : > { %s2134_s14 = scalar_lea.hbm %s2538_s29, 8192  ;;  %p2139_p11 = scmp.lt.s32.totalorder %s2538_s29, %s3031_s8 }
  0x70   : > { %p2135_p8 = scmp.ne.s32.totalorder %s2538_s29, %s2134_s14  ;;  %p2140_p12 = scmp.lt.s32.totalorder %s2138_s24, %s2134_s14 }
  0x72   : > { %p2136_p9 = pnand %p2135_p8, %p2357_p4  ;;  %p2141_p13 = por %p2140_p12, %p2139_p11 }
  0x74   : > { %p2137_p10 = pneg %p2136_p9 }
  0x76   : > { %p2142_p0 = pnand %p2141_p13, %p2137_p10 }
  0x78   : > { %2145 = shalt.err (!%p2142_p0)
}
  0x79   : > { %s2146_s23 = scalar_lea.vmem %s2542_s12, 8192  ;;  %s2252_s30 = smov [#allocation8]  }
  0x7a   : > { %p2147_p1 = scmp.ne.s32.totalorder %s2542_s12, %s2146_s23  ;;  %s2150_s3 = sshll.u32 %s2252_s30, 4  ;;  %s2151_s3 = int_to_ptr.vmem [resolvable:$false] %s2150_s3 }
  0x7b   : > { %s2152_s4 = scalar_lea.vmem %s2151_s3, 16384  ;;  %p2153_p5 = scmp.lt.s32.totalorder %s2542_s12, %s2151_s3 }
  0x7c   : > { %p2148_p2 = pnand %p2147_p1, %p2357_p4  ;;  %p2154_p7 = scmp.lt.s32.totalorder %s2152_s4, %s2146_s23 }
  0x7e   : > { %p2149_p3 = pneg %p2148_p2  ;;  %p2155_p8 = por %p2154_p7, %p2153_p5 }
  0x80   : > { %p2156_p9 = pnand %p2155_p8, %p2149_p3 }
  0x82   : > { %2159 = shalt.err (!%p2156_p9)
}
  0x83   : > { %s2253_s16 = smov 512   ;;  %s2254_s14 = smov 256  }
  0x84   : > { %s2255_s24 = smov 16   ;;  %s3032_s28 = sshll.u32 %s2250_s20, 8 }
  0x85   : > { %2087 = dma.hbm_to_vmem [thread:$0]  (%p2357_p4), %s2538_s29, 8192, %s2542_s12, %s2544_s13, %s2253_s16, %s2254_s14, %s2255_s24  }
  0x86   : > { %s2575_s3 = scalar_lea.hbm %s3013_s7, %s3032_s28  ;;  %s614_s4 = scalar_lea.vmem [#allocation6], %s2009_s17 }
  0x87   : > { %s621_s5 = sshll.u32 %s614_s4, 4  ;;  %s2015_s6 = sshll.u32 %s2528_s15, 8  ;;  %s2579_s5 = int_to_ptr.vmem [resolvable:$true] %s621_s5 }
  0x88   : > { %s611_s8 = scalar_lea.sflag [#allocation7], %s2528_s15  ;;  %s2160_s25 = scalar_lea.hbm %s2575_s3, 8192 }
  0x89   : > { %p2161_p10 = scmp.ne.s32.totalorder %s2575_s3, %s2160_s25  ;;  %s2164_s28 = scalar_lea.hbm %s3013_s7, 16384 }
  0x8a   : > { %p2165_p13 = scmp.lt.s32.totalorder %s2575_s3, %s3013_s7  ;;  %p2166_p0 = scmp.lt.s32.totalorder %s2164_s28, %s2160_s25 }
  0x8b   : > { %p2162_p11 = pnand %p2161_p10, %p2357_p4 }
  0x8c   : > { %p2167_p1 = por %p2166_p0, %p2165_p13 }
  0x8d   : > { %p2163_p12 = pneg %p2162_p11 }
  0x8f   : > { %p2168_p2 = pnand %p2167_p1, %p2163_p12 }
  0x91   : > { %2171 = shalt.err (!%p2168_p2)
}
  0x92   : > { %s2172_s17 = scalar_lea.vmem %s2579_s5, 8192  ;;  %s2256_s4 = smov [#allocation6]  }
  0x93   : > { %p2173_p3 = scmp.ne.s32.totalorder %s2579_s5, %s2172_s17  ;;  %s2176_s29 = sshll.u32 %s2256_s4, 4  ;;  %s2177_s29 = int_to_ptr.vmem [resolvable:$false] %s2176_s29 }
  0x94   : > { %s2178_s12 = scalar_lea.vmem %s2177_s29, 16384  ;;  %p2179_p8 = scmp.lt.s32.totalorder %s2579_s5, %s2177_s29 }
  0x95   : > { %p2174_p5 = pnand %p2173_p3, %p2357_p4  ;;  %p2180_p9 = scmp.lt.s32.totalorder %s2178_s12, %s2172_s17 }
  0x97   : > { %p2175_p7 = pneg %p2174_p5  ;;  %p2181_p10 = por %p2180_p9, %p2179_p8 }
  0x99   : > { %p2182_p11 = pnand %p2181_p10, %p2175_p7 }
  0x9b   : > { %2185 = shalt.err (!%p2182_p11)
}
  0x9c   : > { %2086 = dma.hbm_to_vmem [thread:$0]  (%p2357_p4), %s2575_s3, 8192, %s2579_s5, %s611_s8, %s2253_s16, %s2254_s14, %s2255_s24  }
  0x9d   : > { %s2050_s25 = sshll.u32 %s2250_s20, 12  ;;  %s656_s17 = scalar_lea.vmem [#allocation10], %s2015_s6 }
  0x9e   : > { %s2610_s30 = scalar_lea.hbm %s3015_s9, %s2050_s25  ;;  %s663_s4 = sshll.u32 %s656_s17, 4  ;;  %s2614_s4 = int_to_ptr.vmem [resolvable:$true] %s663_s4 }
  0x9f   : > { %s2186_s29 = scalar_lea.hbm %s2610_s30, 4096  ;;  %s2190_s16 = scalar_lea.hbm %s3015_s9, 8192 }
  0xa0   : > { %p2187_p12 = scmp.ne.s32.totalorder %s2610_s30, %s2186_s29  ;;  %p2191_p1 = scmp.lt.s32.totalorder %s2610_s30, %s3015_s9 }
  0xa1   : > { %p2192_p2 = scmp.lt.s32.totalorder %s2190_s16, %s2186_s29 }
  0xa2   : > { %p2188_p13 = pnand %p2187_p12, %p2357_p4 }
  0xa3   : > { %p2193_p3 = por %p2192_p2, %p2191_p1 }
  0xa4   : > { %p2189_p0 = pneg %p2188_p13 }
  0xa6   : > { %p2194_p5 = pnand %p2193_p3, %p2189_p0 }
  0xa8   : > { %2197 = shalt.err (!%p2194_p5)
}
  0xa9   : > { %s2198_s6 = scalar_lea.vmem %s2614_s4, 4096  ;;  %s2257_s15 = smov [#allocation10]  }
  0xaa   : > { %p2199_p7 = scmp.ne.s32.totalorder %s2614_s4, %s2198_s6  ;;  %s2202_s3 = sshll.u32 %s2257_s15, 4  ;;  %s2203_s3 = int_to_ptr.vmem [resolvable:$false] %s2202_s3 }
  0xab   : > { %s2204_s12 = scalar_lea.vmem %s2203_s3, 8192  ;;  %p2205_p10 = scmp.lt.s32.totalorder %s2614_s4, %s2203_s3 }
  0xac   : > { %p2200_p8 = pnand %p2199_p7, %p2357_p4  ;;  %p2206_p11 = scmp.lt.s32.totalorder %s2204_s12, %s2198_s6 }
  0xae   : > { %p2201_p9 = pneg %p2200_p8  ;;  %p2207_p12 = por %p2206_p11, %p2205_p10 }
  0xb0   : > { %p2208_p13 = pnand %p2207_p12, %p2201_p9 }
  0xb2   : > { %2211 = shalt.err (!%p2208_p13)
}
  0xb3   : > { %s2258_s25 = smov 128   ;;  %s2259_s28 = smov 8  }
  0xb4   : > { %2088 = dma.hbm_to_vmem [thread:$0]  (%p2357_p4), %s2610_s30, 4096, %s2614_s4, %s2544_s13, %s2258_s25, %s2258_s25, %s2259_s28  }
  0xb5 PF: > { %p2018_p0 = scmp.ge.s32.totalorder %s2250_s20, 1  ;;  %p671_p1 = scmp.lt.s32.totalorder %s2250_s20, 3 }
  0xb7   : > { %p672_p2 = pnand %p2018_p0, %p671_p1 }
  0xb8   : > { %s2640_s23 = sand.u32 (!%p672_p2), 1, %s2242_s18  }
  0xb9   : > { %675 = sbr.rel (%p672_p2) target bundleno = 704 (0x2c0), region = 136  ;;  %s2019_s17 = sshll.u32 (!%p672_p2), %s2640_s23, 5 }
  0xba   : > { %s2022_s29 = sshll.u32 (!%p672_p2), %s2640_s23, 9  ;;  %s2644_s5 = scalar_lea.vmem (!%p672_p2), [#allocation2], %s2019_s17 }
  0xbb   : > { %s2646_s26 = scalar_lea.vmem (!%p672_p2), [#allocation3], %s2019_s17  ;;  %s2648_s13 = scalar_lea.vmem (!%p672_p2), [#allocation4], %s2019_s17 }
  0xbc   : > { %s2650_s30 = scalar_lea.vmem (!%p672_p2), [#allocation5], %s2022_s29  ;;  %s706_s20 = scalar_lea.sflag (!%p672_p2), [#allocation7], %s2640_s23 }
  0xbd   : > { %s2653_s4 = scalar_lea.vmem (!%p672_p2), [#allocation6], %s2022_s29 }
  0xbe   : > { %2229 = dma.done.wait (%p2362_p6), %s706_s20, 8192  }
  0xbf   : > { %2231 = vsyncadd (%p2362_p6), %s706_s20, 4294959104  ;;  %s714_s8 = sand.u32 1, %s2342_s21   ;;  %s2660_s14 = scalar_lea.vmem [#allocation8], %s2022_s29 }
  0xc0   : > { %s715_s16 = scalar_lea.sflag [#allocation9], %s714_s8 }
  0xc1   : > { %2233 = dma.done.wait (%p2362_p6), %s715_s16, 12288  }
  0xc2   : > { %2235 = vsyncadd (%p2362_p6), %s715_s16, 4294955008  ;;  %v2260_v12 = vmov 0.0   ;;  %v957_v13 = vld [vmem:[%s2650_s30 + $0xf8] sm:$0xff]  ;;  %v956_v14 = vld [vmem:[%s2650_s30 + $0xf0] sm:$0xff]  ;;  %vm828_vm0 = vcmask 1041408   ;;  %vm824_vm1 = vcmask 80896  }
  0xc3   : > { %899 = vmatprep.mubr.f32.mxu0 %v2260_v12  ;;  %v955_v15 = vld [vmem:[%s2650_s30 + $0xe8] sm:$0xff]  ;;  %1001 = vmatprep.subr.mxu1 %v957_v13  ;;  %v954_v16 = vld [vmem:[%s2650_s30 + $0xe0] sm:$0xff]  ;;  %v953_v17 = vld [vmem:[%s2650_s30 + $0xd8] sm:$0xff]  ;;  %s2025_s3 = sshll.u32 %s2640_s23, 8  ;;  %s2026_s25 = sshll.u32 %s2342_s21, 1  ;;  %vm1636_vm2 = vcmask 1040384  }
  0xc4   : > { %1002 = vmatpush1.msra.mxu1 %v956_v14  ;;  %v952_v18 = vld [vmem:[%s2650_s30 + $0xd0] sm:$0xff]  ;;  %v823_v19 = vld [vmem:[%s2644_s5 + $0x18] sm:$0x3]  ;;  %v951_v20 = vld [vmem:[%s2650_s30 + $0xc8] sm:$0xff]  ;;  %s2914_s12 = scalar_lea.vmem [#allocation10], %s2025_s3  ;;  %p798_p4 = scmp.lt.s32.totalorder %s2026_s25, 3 }
  0xc5   : > { %1003 = vmatprep.subr.mxu1 %v955_v15  ;;  %2030 = vmatprep.subr.msk.mxu0 %vm828_vm0, %v823_v19  ;;  %v822_v21 = vld [vmem:[%s2644_s5 + $0x10] sm:$0x3]  ;;  %v950_v22 = vld [vmem:[%s2650_s30 + $0xc0] sm:$0xff]  ;;  %v821_v23 = vld [vmem:[%s2644_s5 + $0x8] sm:$0xff]  ;;  %p2041_p6 = scmp.ne.s32.totalorder %s2342_s21, 0 }
  0xc6   : > { %1004 = vmatpush1.msra.mxu1 %v954_v16  ;;  %2031 = vmatpush1.msk.msra.mxu0 %vm828_vm0, %v822_v21  ;;  %v820_v24 = vld [vmem:[%s2644_s5] sm:$0xff]  ;;  %v949_v25 = vld [vmem:[%s2650_s30 + $0xb8] sm:$0xff]  ;;  %v948_v27 = vld [vmem:[%s2650_s30 + $0xb0] sm:$0xff]  ;;  %s3039_s25 = smov (!%p798_p4, %s2026_s25), 3 }
  0xc7   : > { %1005 = vmatprep.subr.mxu1 %v953_v17  ;;  %865 = vmatprep.subr.mxu0 %v821_v23  ;;  %v1094_v26 = vld [vmem:[%s2646_s26 + $0x18] sm:$0x3]  ;;  %v816_v28 = vld [vmem:[%s3006_s0] sm:$0x1]  ;;  %v947_v29 = vld [vmem:[%s2650_s30 + $0xa8] sm:$0xff]  ;;  %s2027_s28 = sshll.u32 %s3039_s25, 2 }
  0xc8   : > { %1006 = vmatpush1.msra.mxu1 %v952_v18  ;;  %866 = vmatpush1.msra.mxu0 %v820_v24  ;;  %2132 = vtanh.f32 %v816_v28  ;;  %v946_v30 = vld [vmem:[%s2650_s30 + $0xa0] sm:$0xff]  ;;  %v945_v31 = vld [vmem:[%s2650_s30 + $0x98] sm:$0xff]  ;;  %v944_v32 = vld [vmem:[%s2650_s30 + $0x90] sm:$0xff]  ;;  %s801_s29 = scalar_lea.vmem %s3008_s2, %s2027_s28 }
  0xc9   : > { %1007 = vmatprep.subr.mxu1 %v951_v20  ;;  %2033 = vmatprep.subr.msk.mxu0 %vm828_vm0, %v1094_v26  ;;  %v943_v33 = vld [vmem:[%s2650_s30 + $0x88] sm:$0xff]  ;;  %v942_v34 = vld [vmem:[%s2650_s30 + $0x80] sm:$0xff]  ;;  %v941_v35 = vld [vmem:[%s2650_s30 + $0x78] sm:$0xff] }
  0xca   : > { %1008 = vmatpush1.msra.mxu1 %v950_v22  ;;  %v940_v36 = vld [vmem:[%s2650_s30 + $0x70] sm:$0xff]  ;;  %v939_v37 = vld [vmem:[%s2650_s30 + $0x68] sm:$0xff]  ;;  %v938_v38 = vld [vmem:[%s2650_s30 + $0x60] sm:$0xff] }
  0xcb   : > { %1009 = vmatprep.subr.mxu1 %v949_v25  ;;  %v937_v39 = vld [vmem:[%s2650_s30 + $0x58] sm:$0xff]  ;;  %v936_v40 = vld [vmem:[%s2650_s30 + $0x50] sm:$0xff]  ;;  %v935_v41 = vld [vmem:[%s2650_s30 + $0x48] sm:$0xff] }
  0xcc   : > { %1010 = vmatpush1.msra.mxu1 %v948_v27  ;;  %v934_v43 = vld [vmem:[%s2650_s30 + $0x40] sm:$0xff]  ;;  %v1093_v45 = vld [vmem:[%s2646_s26 + $0x10] sm:$0x3]  ;;  %v1092_v46 = vld [vmem:[%s2646_s26 + $0x8] sm:$0xff] }
  0xcd   : > { %1011 = vmatprep.subr.mxu1 %v947_v29  ;;  %v933_v47 = vld [vmem:[%s2650_s30 + $0x38] sm:$0xff]  ;;  %v1091_v48 = vld [vmem:[%s2646_s26] sm:$0xff]  ;;  %v932_v49 = vld [vmem:[%s2650_s30 + $0x30] sm:$0xff] }
  0xce   : > { %1012 = vmatpush1.msra.mxu1 %v946_v30  ;;  %v1224_v50 = vld [vmem:[%s2653_s4 + $0xf8] sm:$0xff]  ;;  %v1223_v51 = vld [vmem:[%s2653_s4 + $0xf0] sm:$0xff]  ;;  %v931_v52 = vld [vmem:[%s2650_s30 + $0x28] sm:$0xff] }
  0xcf   : > { %1013 = vmatprep.subr.mxu1 %v945_v31  ;;  %v1222_v53 = vld [vmem:[%s2653_s4 + $0xe8] sm:$0xff]  ;;  %v930_v54 = vld [vmem:[%s2650_s30 + $0x20] sm:$0xff]  ;;  %v929_v56 = vld [vmem:[%s2650_s30 + $0x18] sm:$0xff] }
  0xd0   : > { %1014 = vmatpush1.msra.mxu1 %v944_v32  ;;  %v1221_v55 = vld [vmem:[%s2653_s4 + $0xe0] sm:$0xff]  ;;  %v1220_v57 = vld [vmem:[%s2653_s4 + $0xd8] sm:$0xff]  ;;  %v928_v58 = vld [vmem:[%s2650_s30 + $0x10] sm:$0xff] }
  0xd1   : > { %1015 = vmatprep.subr.mxu1 %v943_v33  ;;  %v1219_v59 = vld [vmem:[%s2653_s4 + $0xd0] sm:$0xff]  ;;  %v927_v60 = vld [vmem:[%s2650_s30 + $0x8] sm:$0xff]  ;;  %v926_v62 = vld [vmem:[%s2650_s30] sm:$0xff] }
  0xd2   : > { %1016 = vmatpush1.msra.mxu1 %v942_v34  ;;  %v1218_v61 = vld [vmem:[%s2653_s4 + $0xc8] sm:$0xff]  ;;  %v1217_v63 = vld [vmem:[%s2653_s4 + $0xc0] sm:$0xff]  ;;  %v989_v0 = vld [vmem:[%s2650_s30 + $0x1f8] sm:$0xff] }
  0xd3   : > { %1017 = vmatprep.subr.mxu1 %v941_v35  ;;  %v1216_v1 = vld [vmem:[%s2653_s4 + $0xb8] sm:$0xff]  ;;  %v988_v2 = vld [vmem:[%s2650_s30 + $0x1f0] sm:$0xff]  ;;  %v987_v4 = vld [vmem:[%s2650_s30 + $0x1e8] sm:$0xff] }
  0xd4   : > { %1018 = vmatpush1.msra.mxu1 %v940_v36  ;;  %v1215_v3 = vld [vmem:[%s2653_s4 + $0xb0] sm:$0xff]  ;;  %v1214_v5 = vld [vmem:[%s2653_s4 + $0xa8] sm:$0xff]  ;;  %v986_v6 = vld [vmem:[%s2650_s30 + $0x1e0] sm:$0xff] }
  0xd5   : > { %1019 = vmatprep.subr.mxu1 %v939_v37  ;;  %v2133_v42 = vpop.eup %2132  ;;  %v1213_v7 = vld [vmem:[%s2653_s4 + $0xa0] sm:$0xff]  ;;  %v985_v8 = vld [vmem:[%s2650_s30 + $0x1d8] sm:$0xff]  ;;  %v984_v10 = vld [vmem:[%s2650_s30 + $0x1d0] sm:$0xff] }
  0xd6   : > { %1020 = vmatpush1.msra.mxu1 %v938_v38  ;;  %v2702_v44 = vmul.f32 3.0, %v2133_v42  ;;  %v1212_v9 = vld [vmem:[%s2653_s4 + $0x98] sm:$0xff]  ;;  %v1211_v11 = vld [vmem:[%s2653_s4 + $0x90] sm:$0xff]  ;;  %v983_v13 = vld [vmem:[%s2650_s30 + $0x1c8] sm:$0xff] }
  0xd7   : > { %1021 = vmatprep.subr.mxu1 %v937_v39  ;;  %v1210_v14 = vld [vmem:[%s2653_s4 + $0x88] sm:$0xff]  ;;  %v982_v15 = vld [vmem:[%s2650_s30 + $0x1c0] sm:$0xff]  ;;  %v981_v17 = vld [vmem:[%s2650_s30 + $0x1b8] sm:$0xff] }
  0xd8   : > { %1022 = vmatpush1.msra.mxu1 %v936_v40  ;;  %2032 = vmatmul.mubr.msk.f32.vlgmr.msra.gmra.mxu0 %vm824_vm1, %v2702_v44  ;;  %v1209_v16 = vld [vmem:[%s2653_s4 + $0x80] sm:$0xff]  ;;  %v1208_v18 = vld [vmem:[%s2653_s4 + $0x78] sm:$0xff]  ;;  %v980_v19 = vld [vmem:[%s2650_s30 + $0x1b0] sm:$0xff]  ;;  %v913_v40 = vlaneseq }
  0xd9   : > { %1023 = vmatprep.subr.mxu1 %v935_v41  ;;  %2034 = vmatpush1.msk.msra.mxu0 %vm828_vm0, %v1093_v45  ;;  %v1207_v20 = vld [vmem:[%s2653_s4 + $0x70] sm:$0xff]  ;;  %v979_v21 = vld [vmem:[%s2650_s30 + $0x1a8] sm:$0xff]  ;;  %v978_v23 = vld [vmem:[%s2650_s30 + $0x1a0] sm:$0xff] }
  0xda   : > { %1024 = vmatpush1.msra.mxu1 %v934_v43  ;;  %1165 = vmatprep.mubr.f32.mxu0 %v2260_v12  ;;  %v1206_v22 = vld [vmem:[%s2653_s4 + $0x68] sm:$0xff]  ;;  %v1205_v24 = vld [vmem:[%s2653_s4 + $0x60] sm:$0xff]  ;;  %v977_v25 = vld [vmem:[%s2650_s30 + $0x198] sm:$0xff] }
  0xdb   : > { %1131 = vmatprep.subr.mxu0 %v1092_v46  ;;  %1025 = vmatprep.subr.mxu1 %v933_v47  ;;  %v1204_v26 = vld [vmem:[%s2653_s4 + $0x58] sm:$0xff]  ;;  %v976_v27 = vld [vmem:[%s2650_s30 + $0x190] sm:$0xff]  ;;  %v975_v29 = vld [vmem:[%s2650_s30 + $0x188] sm:$0xff] }
  0xdc   : > { %1132 = vmatpush1.msra.mxu0 %v1091_v48  ;;  %1026 = vmatpush1.msra.mxu1 %v932_v49  ;;  %v1203_v28 = vld [vmem:[%s2653_s4 + $0x50] sm:$0xff]  ;;  %v1202_v30 = vld [vmem:[%s2653_s4 + $0x48] sm:$0xff]  ;;  %v974_v31 = vld [vmem:[%s2650_s30 + $0x180] sm:$0xff] }
  0xdd   : > { %1257 = vmatprep.subr.mxu0 %v1224_v50  ;;  %2035 = vmatmul.mubr.msk.f32.vlgmr.msra.gmra.mxu0 %vm824_vm1, %v2702_v44  ;;  %v1201_v32 = vld [vmem:[%s2653_s4 + $0x40] sm:$0xff]  ;;  %v973_v33 = vld [vmem:[%s2650_s30 + $0x178] sm:$0xff]  ;;  %v972_v35 = vld [vmem:[%s2650_s30 + $0x170] sm:$0xff]  ;;  %v2776_v50 = vshrl.u32 %v913_v40, 7 }
  0xde   : > { %1258 = vmatpush1.msra.mxu0 %v1223_v51  ;;  %1027 = vmatprep.subr.mxu1 %v931_v52  ;;  %v1200_v34 = vld [vmem:[%s2653_s4 + $0x38] sm:$0xff]  ;;  %v1199_v36 = vld [vmem:[%s2653_s4 + $0x30] sm:$0xff]  ;;  %v971_v37 = vld [vmem:[%s2650_s30 + $0x168] sm:$0xff] }
  0xdf   : > { %1259 = vmatprep.subr.mxu0 %v1222_v53  ;;  %1028 = vmatpush1.msra.mxu1 %v930_v54  ;;  %v1198_v38 = vld [vmem:[%s2653_s4 + $0x28] sm:$0xff]  ;;  %v970_v39 = vld [vmem:[%s2650_s30 + $0x160] sm:$0xff]  ;;  %v969_v42 = vld [vmem:[%s2650_s30 + $0x158] sm:$0xff] }
  0xe0   : > { %1260 = vmatpush1.msra.mxu0 %v1221_v55  ;;  %1029 = vmatprep.subr.mxu1 %v929_v56  ;;  %v1197_v41 = vld [vmem:[%s2653_s4 + $0x20] sm:$0xff]  ;;  %v1196_v43 = vld [vmem:[%s2653_s4 + $0x18] sm:$0xff]  ;;  %v968_v45 = vld [vmem:[%s2650_s30 + $0x150] sm:$0xff] }
  0xe1   : > { %1261 = vmatprep.subr.mxu0 %v1220_v57  ;;  %1030 = vmatpush1.msra.mxu1 %v928_v58  ;;  %v1195_v46 = vld [vmem:[%s2653_s4 + $0x10] sm:$0xff]  ;;  %v967_v47 = vld [vmem:[%s2650_s30 + $0x148] sm:$0xff]  ;;  %v966_v49 = vld [vmem:[%s2650_s30 + $0x140] sm:$0xff] }
  0xe2   : > { %1262 = vmatpush1.msra.mxu0 %v1219_v59  ;;  %1031 = vmatprep.subr.mxu1 %v927_v60  ;;  %v1194_v48 = vld [vmem:[%s2653_s4 + $0x8] sm:$0xff]  ;;  %v1193_v51 = vld [vmem:[%s2653_s4] sm:$0xff]  ;;  %v965_v52 = vld [vmem:[%s2650_s30 + $0x138] sm:$0xff]  ;;  %v2787_v59 = vsub.s32 1, %v2776_v50 }
  0xe3   : > { %1263 = vmatprep.subr.mxu0 %v1218_v61  ;;  %1032 = vmatpush1.msra.mxu1 %v926_v62  ;;  %v1256_v53 = vld [vmem:[%s2653_s4 + $0x1f8] sm:$0xff]  ;;  %v964_v54 = vld [vmem:[%s2650_s30 + $0x130] sm:$0xff]  ;;  %v963_v56 = vld [vmem:[%s2650_s30 + $0x128] sm:$0xff] }
  0xe4   : > { %1264 = vmatpush1.msra.mxu0 %v1217_v63  ;;  %1033 = vmatprep.subr.mxu1 %v989_v0  ;;  %v1255_v55 = vld [vmem:[%s2653_s4 + $0x1f0] sm:$0xff]  ;;  %v1254_v57 = vld [vmem:[%s2653_s4 + $0x1e8] sm:$0xff]  ;;  %v962_v58 = vld [vmem:[%s2650_s30 + $0x120] sm:$0xff]  ;;  %v2795_v63 = vsub.s32 0, %v2776_v50 }
  0xe5   : > { %1265 = vmatprep.subr.mxu0 %v1216_v1  ;;  %1034 = vmatpush2.msra.mxu1 %v988_v2  ;;  %v1253_v60 = vld [vmem:[%s2653_s4 + $0x1e0] sm:$0xff]  ;;  %v961_v61 = vld [vmem:[%s2650_s30 + $0x118] sm:$0xff]  ;;  %v960_v1 = vld [vmem:[%s2650_s30 + $0x110] sm:$0xff] }
  0xe6   : > { %1266 = vmatpush1.msra.mxu0 %v1215_v3  ;;  %1035 = vmatprep.subr.mxu1 %v987_v4  ;;  %v819_v62 = vld [vmem:[%s3007_s1] sm:$0x3]  ;;  %v1252_v0 = vld [vmem:[%s2653_s4 + $0x1d8] sm:$0xff]  ;;  %v1251_v2 = vld [vmem:[%s2653_s4 + $0x1d0] sm:$0xff] }
  0xe7   : > { %1267 = vmatprep.subr.mxu0 %v1214_v5  ;;  %1036 = vmatpush2.msra.mxu1 %v986_v6  ;;  %v959_v3 = vld [vmem:[%s2650_s30 + $0x108] sm:$0xff]  ;;  %v958_v5 = vld [vmem:[%s2650_s30 + $0x100] sm:$0xff]  ;;  %v2804_v6 = vrot.slane %v819_v62, %v2787_v59 }
  0xe8   : > { %1268 = vmatpush1.msra.mxu0 %v1213_v7  ;;  %1037 = vmatprep.subr.mxu1 %v985_v8  ;;  %v1250_v4 = vld [vmem:[%s2653_s4 + $0x1c8] sm:$0xff]  ;;  %v1249_v7 = vld [vmem:[%s2653_s4 + $0x1c0] sm:$0xff]  ;;  %v2808_v8 = vrot.slane %v819_v62, %v2795_v63 }
  0xe9   : > { %1269 = vmatprep.subr.mxu0 %v1212_v9  ;;  %1038 = vmatpush2.msra.mxu1 %v984_v10  ;;  %v1248_v9 = vld [vmem:[%s2653_s4 + $0x1b8] sm:$0xff]  ;;  %v1247_v10 = vld [vmem:[%s2653_s4 + $0x1b0] sm:$0xff]  ;;  %v1466_v40 = vld [vmem:[%s2660_s14 + $0x88] sm:$0xff] }
  0xea   : > { %1270 = vmatpush1.msra.mxu0 %v1211_v11  ;;  %1039 = vmatprep.subr.mxu1 %v983_v13  ;;  %v1480_v11 = vld [vmem:[%s2660_s14 + $0xf8] sm:$0xff]  ;;  %v1246_v13 = vld [vmem:[%s2653_s4 + $0x1a8] sm:$0xff] }
  0xeb   : > { %1271 = vmatprep.subr.mxu0 %v1210_v14  ;;  %1040 = vmatpush2.msra.mxu1 %v982_v15  ;;  %v1479_v14 = vld [vmem:[%s2660_s14 + $0xf0] sm:$0xff]  ;;  %v1245_v15 = vld [vmem:[%s2653_s4 + $0x1a0] sm:$0xff]  ;;  %v1458_v62 = vld [vmem:[%s2660_s14 + $0x48] sm:$0xff] }
  0xec   : > { %1272 = vmatpush1.msra.mxu0 %v1209_v16  ;;  %1041 = vmatprep.subr.mxu1 %v981_v17  ;;  %v1478_v16 = vld [vmem:[%s2660_s14 + $0xe8] sm:$0xff]  ;;  %v1244_v17 = vld [vmem:[%s2653_s4 + $0x198] sm:$0xff] }
  0xed   : > { %1273 = vmatprep.subr.mxu0 %v1208_v18  ;;  %1042 = vmatpush2.msra.mxu1 %v980_v19  ;;  %v1477_v18 = vld [vmem:[%s2660_s14 + $0xe0] sm:$0xff]  ;;  %v1243_v19 = vld [vmem:[%s2653_s4 + $0x190] sm:$0xff] }
  0xee   : > { %1274 = vmatpush1.msra.mxu0 %v1207_v20  ;;  %1043 = vmatprep.subr.mxu1 %v979_v21  ;;  %v1476_v20 = vld [vmem:[%s2660_s14 + $0xd8] sm:$0xff]  ;;  %v1242_v21 = vld [vmem:[%s2653_s4 + $0x188] sm:$0xff] }
  0xef   : > { %1275 = vmatprep.subr.mxu0 %v1206_v22  ;;  %1044 = vmatpush2.msra.mxu1 %v978_v23  ;;  %v1475_v22 = vld [vmem:[%s2660_s14 + $0xd0] sm:$0xff]  ;;  %v1241_v23 = vld [vmem:[%s2653_s4 + $0x180] sm:$0xff] }
  0xf0   : > { %1276 = vmatpush1.msra.mxu0 %v1205_v24  ;;  %1045 = vmatprep.subr.mxu1 %v977_v25  ;;  %v1474_v24 = vld [vmem:[%s2660_s14 + $0xc8] sm:$0xff]  ;;  %v1240_v25 = vld [vmem:[%s2653_s4 + $0x178] sm:$0xff] }
  0xf1   : > { %1277 = vmatprep.subr.mxu0 %v1204_v26  ;;  %1046 = vmatpush2.msra.mxu1 %v976_v27  ;;  %v1473_v26 = vld [vmem:[%s2660_s14 + $0xc0] sm:$0xff]  ;;  %v1239_v27 = vld [vmem:[%s2653_s4 + $0x170] sm:$0xff] }
  0xf2   : > { %1278 = vmatpush1.msra.mxu0 %v1203_v28  ;;  %1047 = vmatprep.subr.mxu1 %v975_v29  ;;  %v1472_v28 = vld [vmem:[%s2660_s14 + $0xb8] sm:$0xff]  ;;  %v1238_v29 = vld [vmem:[%s2653_s4 + $0x168] sm:$0xff] }
  0xf3   : > { %1279 = vmatprep.subr.mxu0 %v1202_v30  ;;  %1048 = vmatpush2.msra.mxu1 %v974_v31  ;;  %v1471_v30 = vld [vmem:[%s2660_s14 + $0xb0] sm:$0xff]  ;;  %v1237_v31 = vld [vmem:[%s2653_s4 + $0x160] sm:$0xff] }
  0xf4   : > { %1280 = vmatpush1.msra.mxu0 %v1201_v32  ;;  %1049 = vmatprep.subr.mxu1 %v973_v33  ;;  %v1470_v32 = vld [vmem:[%s2660_s14 + $0xa8] sm:$0xff]  ;;  %v1236_v33 = vld [vmem:[%s2653_s4 + $0x158] sm:$0xff] }
  0xf5   : > { %1281 = vmatprep.subr.mxu0 %v1200_v34  ;;  %1050 = vmatpush2.msra.mxu1 %v972_v35  ;;  %v1469_v34 = vld [vmem:[%s2660_s14 + $0xa0] sm:$0xff]  ;;  %v1235_v35 = vld [vmem:[%s2653_s4 + $0x150] sm:$0xff] }
  0xf6   : > { %1282 = vmatpush1.msra.mxu0 %v1199_v36  ;;  %1051 = vmatprep.subr.mxu1 %v971_v37  ;;  %v1468_v36 = vld [vmem:[%s2660_s14 + $0x98] sm:$0xff]  ;;  %v1234_v37 = vld [vmem:[%s2653_s4 + $0x148] sm:$0xff] }
  0xf7   : > { %1283 = vmatprep.subr.mxu0 %v1198_v38  ;;  %1052 = vmatpush2.msra.mxu1 %v970_v39  ;;  %v1467_v38 = vld [vmem:[%s2660_s14 + $0x90] sm:$0xff]  ;;  %v1233_v39 = vld [vmem:[%s2653_s4 + $0x140] sm:$0xff] }
  0xf8   : > { %1284 = vmatpush1.msra.mxu0 %v1197_v41  ;;  %1053 = vmatprep.subr.mxu1 %v969_v42  ;;  %v1232_v41 = vld [vmem:[%s2653_s4 + $0x138] sm:$0xff]  ;;  %v1465_v42 = vld [vmem:[%s2660_s14 + $0x80] sm:$0xff] }
  0xf9   : > { %1285 = vmatprep.subr.mxu0 %v1196_v43  ;;  %1054 = vmatpush2.msra.mxu1 %v968_v45  ;;  %v1231_v43 = vld [vmem:[%s2653_s4 + $0x130] sm:$0xff]  ;;  %v1464_v45 = vld [vmem:[%s2660_s14 + $0x78] sm:$0xff] }
  0xfa   : > { %1286 = vmatpush1.msra.mxu0 %v1195_v46  ;;  %1055 = vmatprep.subr.mxu1 %v967_v47  ;;  %v1230_v46 = vld [vmem:[%s2653_s4 + $0x128] sm:$0xff]  ;;  %v1463_v47 = vld [vmem:[%s2660_s14 + $0x70] sm:$0xff] }
  0xfb   : > { %1287 = vmatprep.subr.mxu0 %v1194_v48  ;;  %1056 = vmatpush2.msra.mxu1 %v966_v49  ;;  %v1229_v48 = vld [vmem:[%s2653_s4 + $0x120] sm:$0xff]  ;;  %v1228_v49 = vld [vmem:[%s2653_s4 + $0x118] sm:$0xff] }
  0xfc   : > { %1288 = vmatpush1.msra.mxu0 %v1193_v51  ;;  %1057 = vmatprep.subr.mxu1 %v965_v52  ;;  %v1462_v51 = vld [vmem:[%s2660_s14 + $0x68] sm:$0xff]  ;;  %v1227_v52 = vld [vmem:[%s2653_s4 + $0x110] sm:$0xff] }
  0xfd   : > { %1289 = vmatprep.subr.mxu0 %v1256_v53  ;;  %1058 = vmatpush2.msra.mxu1 %v964_v54  ;;  %v1461_v53 = vld [vmem:[%s2660_s14 + $0x60] sm:$0xff]  ;;  %v1226_v54 = vld [vmem:[%s2653_s4 + $0x108] sm:$0xff] }
  0xfe   : > { %1290 = vmatpush2.msra.mxu0 %v1255_v55  ;;  %1059 = vmatprep.subr.mxu1 %v963_v56  ;;  %v1460_v55 = vld [vmem:[%s2660_s14 + $0x58] sm:$0xff]  ;;  %v1225_v56 = vld [vmem:[%s2653_s4 + $0x100] sm:$0xff] }
  0xff   : > { %1291 = vmatprep.subr.mxu0 %v1254_v57  ;;  %1060 = vmatpush2.msra.mxu1 %v962_v58  ;;  %v1459_v57 = vld [vmem:[%s2660_s14 + $0x50] sm:$0xff]  ;;  %v1350_v58 = vld [vmem:[%s2648_s13 + $0x18] sm:$0x3] }
 0x100   : > { %1292 = vmatpush2.msra.mxu0 %v1253_v60  ;;  %1061 = vmatprep.subr.mxu1 %v961_v61  ;;  %v1349_v60 = vld [vmem:[%s2648_s13 + $0x10] sm:$0x3]  ;;  %v1348_v61 = vld [vmem:[%s2648_s13 + $0x8] sm:$0xff] }
 0x101   : > { %1293 = vmatprep.subr.mxu0 %v1252_v0  ;;  %1062 = vmatpush2.msra.mxu1 %v960_v1  ;;  %v1347_v0 = vld [vmem:[%s2648_s13] sm:$0xff]  ;;  %s814_s13 = scalar_lea.vmem %s3016_s10, %s2027_s28 }
 0x102   : > { %1294 = vmatpush2.msra.mxu0 %v1251_v2  ;;  %1063 = vmatprep.subr.mxu1 %v959_v3  ;;  %v1457_v1 = vld [vmem:[%s2660_s14 + $0x40] sm:$0xff]  ;;  %v1456_v2 = vld [vmem:[%s2660_s14 + $0x38] sm:$0xff]  ;;  %v1455_v3 = vld [vmem:[%s2660_s14 + $0x30] sm:$0xff] }
 0x103   : > { %1295 = vmatprep.subr.mxu0 %v1250_v4  ;;  %1064 = vmatpush2.msra.mxu1 %v958_v5  ;;  %v1454_v4 = vld [vmem:[%s2660_s14 + $0x28] sm:$0xff]  ;;  %v1453_v5 = vld [vmem:[%s2660_s14 + $0x20] sm:$0xff] }
 0x104   : > { %1296 = vmatpush2.msra.mxu0 %v1249_v7  ;;  %1065 = vmatprep.mubr.f32.mxu1 %v2804_v6  ;;  %v1451_v7 = vld [vmem:[%s2660_s14 + $0x10] sm:$0xff] }
 0x105   : > { %1297 = vmatprep.subr.mxu0 %v1248_v9  ;;  %1066 = vmatmul.mubr.f32.vlgmr.msra.gmra.mxu1 %v2808_v8  ;;  %v1450_v9 = vld [vmem:[%s2660_s14 + $0x8] sm:$0xff] }
 0x106   : > { %1298 = vmatpush2.msra.mxu0 %v1247_v10  ;;  %1513 = vmatprep.subr.mxu1 %v1480_v11  ;;  %v1449_v10 = vld [vmem:[%s2660_s14] sm:$0xff]  ;;  %v1511_v11 = vld [vmem:[%s2660_s14 + $0x1f0] sm:$0xff] }
 0x107   : > { %1299 = vmatprep.subr.mxu0 %v1246_v13  ;;  %1514 = vmatpush1.msra.mxu1 %v1479_v14  ;;  %v1510_v13 = vld [vmem:[%s2660_s14 + $0x1e8] sm:$0xff]  ;;  %v1508_v14 = vld [vmem:[%s2660_s14 + $0x1d8] sm:$0xff] }
 0x108   : > { %1300 = vmatpush2.msra.mxu0 %v1245_v15  ;;  %1515 = vmatprep.subr.mxu1 %v1478_v16  ;;  %v1507_v15 = vld [vmem:[%s2660_s14 + $0x1d0] sm:$0xff]  ;;  %v1506_v16 = vld [vmem:[%s2660_s14 + $0x1c8] sm:$0xff] }
 0x109   : > { %1301 = vmatprep.subr.mxu0 %v1244_v17  ;;  %1516 = vmatpush1.msra.mxu1 %v1477_v18  ;;  %v1505_v17 = vld [vmem:[%s2660_s14 + $0x1c0] sm:$0xff]  ;;  %v1504_v18 = vld [vmem:[%s2660_s14 + $0x1b8] sm:$0xff] }
 0x10a   : > { %1302 = vmatpush2.msra.mxu0 %v1243_v19  ;;  %1517 = vmatprep.subr.mxu1 %v1476_v20  ;;  %v1503_v19 = vld [vmem:[%s2660_s14 + $0x1b0] sm:$0xff]  ;;  %v1502_v20 = vld [vmem:[%s2660_s14 + $0x1a8] sm:$0xff] }
 0x10b   : > { %1303 = vmatprep.subr.mxu0 %v1242_v21  ;;  %1518 = vmatpush1.msra.mxu1 %v1475_v22  ;;  %v1501_v21 = vld [vmem:[%s2660_s14 + $0x1a0] sm:$0xff]  ;;  %v1500_v22 = vld [vmem:[%s2660_s14 + $0x198] sm:$0xff] }
 0x10c   : > { %1304 = vmatpush2.msra.mxu0 %v1241_v23  ;;  %1519 = vmatprep.subr.mxu1 %v1474_v24  ;;  %v1499_v23 = vld [vmem:[%s2660_s14 + $0x190] sm:$0xff]  ;;  %v1498_v24 = vld [vmem:[%s2660_s14 + $0x188] sm:$0xff] }
 0x10d   : > { %1305 = vmatprep.subr.mxu0 %v1240_v25  ;;  %1520 = vmatpush1.msra.mxu1 %v1473_v26  ;;  %v1497_v25 = vld [vmem:[%s2660_s14 + $0x180] sm:$0xff]  ;;  %v1496_v26 = vld [vmem:[%s2660_s14 + $0x178] sm:$0xff] }
 0x10e   : > { %1306 = vmatpush2.msra.mxu0 %v1239_v27  ;;  %1521 = vmatprep.subr.mxu1 %v1472_v28  ;;  %v1495_v27 = vld [vmem:[%s2660_s14 + $0x170] sm:$0xff]  ;;  %v1494_v28 = vld [vmem:[%s2660_s14 + $0x168] sm:$0xff] }
 0x10f   : > { %1307 = vmatprep.subr.mxu0 %v1238_v29  ;;  %1522 = vmatpush1.msra.mxu1 %v1471_v30  ;;  %v1493_v29 = vld [vmem:[%s2660_s14 + $0x160] sm:$0xff]  ;;  %v1492_v30 = vld [vmem:[%s2660_s14 + $0x158] sm:$0xff] }
 0x110   : > { %1308 = vmatpush2.msra.mxu0 %v1237_v31  ;;  %1523 = vmatprep.subr.mxu1 %v1470_v32  ;;  %v1491_v31 = vld [vmem:[%s2660_s14 + $0x150] sm:$0xff]  ;;  %v1490_v32 = vld [vmem:[%s2660_s14 + $0x148] sm:$0xff] }
 0x111   : > { %1309 = vmatprep.subr.mxu0 %v1236_v33  ;;  %1524 = vmatpush1.msra.mxu1 %v1469_v34  ;;  %v1489_v33 = vld [vmem:[%s2660_s14 + $0x140] sm:$0xff]  ;;  %v1488_v34 = vld [vmem:[%s2660_s14 + $0x138] sm:$0xff] }
 0x112   : > { %1310 = vmatpush2.msra.mxu0 %v1235_v35  ;;  %1525 = vmatprep.subr.mxu1 %v1468_v36  ;;  %v1487_v35 = vld [vmem:[%s2660_s14 + $0x130] sm:$0xff]  ;;  %v1486_v36 = vld [vmem:[%s2660_s14 + $0x128] sm:$0xff] }
 0x113   : > { %1311 = vmatprep.subr.mxu0 %v1234_v37  ;;  %1526 = vmatpush1.msra.mxu1 %v1467_v38  ;;  %v1485_v37 = vld [vmem:[%s2660_s14 + $0x120] sm:$0xff]  ;;  %v1484_v38 = vld [vmem:[%s2660_s14 + $0x118] sm:$0xff] }
 0x114   : > { %1312 = vmatpush2.msra.mxu0 %v1233_v39  ;;  %1527 = vmatprep.subr.mxu1 %v1466_v40  ;;  %v1483_v39 = vld [vmem:[%s2660_s14 + $0x110] sm:$0xff]  ;;  %v1482_v40 = vld [vmem:[%s2660_s14 + $0x108] sm:$0xff] }
 0x115   : > { %1313 = vmatprep.subr.mxu0 %v1232_v41  ;;  %1528 = vmatpush1.msra.mxu1 %v1465_v42  ;;  %v1481_v41 = vld [vmem:[%s2660_s14 + $0x100] sm:$0xff]  ;;  %v1714_v42 = vld [vmem:[%s2914_s12 + $0xf8] sm:$0xff] }
 0x116   : > { %1314 = vmatpush2.msra.mxu0 %v1231_v43  ;;  %1529 = vmatprep.subr.mxu1 %v1464_v45  ;;  %v1698_v43 = vld [vmem:[%s2914_s12 + $0x78] sm:$0xff]  ;;  %v1713_v45 = vld [vmem:[%s2914_s12 + $0xf0] sm:$0xff] }
 0x117   : > { %1315 = vmatprep.subr.mxu0 %v1230_v46  ;;  %1530 = vmatpush1.msra.mxu1 %v1463_v47  ;;  %v1697_v46 = vld [vmem:[%s2914_s12 + $0x70] sm:$0xff]  ;;  %v1696_v47 = vld [vmem:[%s2914_s12 + $0x68] sm:$0xff] }
 0x118   : > { %1316 = vmatpush2.msra.mxu0 %v1229_v48  ;;  %1321 = vmatprep.mubr.f32.mxu0 %v2804_v6  ;;  %v1711_v48 = vld [vmem:[%s2914_s12 + $0xe0] sm:$0xff] }
 0x119   : > { %1317 = vmatprep.subr.mxu0 %v1228_v49  ;;  %1531 = vmatprep.subr.mxu1 %v1462_v51  ;;  %v1695_v49 = vld [vmem:[%s2914_s12 + $0x60] sm:$0xff]  ;;  %v1710_v51 = vld [vmem:[%s2914_s12 + $0xd8] sm:$0xff] }
 0x11a   : > { %1318 = vmatpush2.msra.mxu0 %v1227_v52  ;;  %1532 = vmatpush1.msra.mxu1 %v1461_v53  ;;  %v1694_v52 = vld [vmem:[%s2914_s12 + $0x58] sm:$0xff]  ;;  %v1709_v53 = vld [vmem:[%s2914_s12 + $0xd0] sm:$0xff] }
 0x11b   : > { %1319 = vmatprep.subr.mxu0 %v1226_v54  ;;  %1533 = vmatprep.subr.mxu1 %v1460_v55  ;;  %v1693_v54 = vld [vmem:[%s2914_s12 + $0x50] sm:$0xff]  ;;  %v1708_v55 = vld [vmem:[%s2914_s12 + $0xc8] sm:$0xff] }
 0x11c   : > { %1320 = vmatpush2.msra.mxu0 %v1225_v56  ;;  %1534 = vmatpush1.msra.mxu1 %v1459_v57  ;;  %v1692_v56 = vld [vmem:[%s2914_s12 + $0x48] sm:$0xff]  ;;  %v1707_v57 = vld [vmem:[%s2914_s12 + $0xc0] sm:$0xff] }
 0x11d   : > { %1322 = vmatmul.mubr.f32.vlgmr.msra.gmra.mxu0 %v2808_v8  ;;  %2037 = vmatprep.subr.msk.mxu0 %vm828_vm0, %v1350_v58  ;;  %v1691_v58 = vld [vmem:[%s2914_s12 + $0x40] sm:$0xff] }
 0x11e   : > { %2038 = vmatpush1.msk.msra.mxu0 %vm828_vm0, %v1349_v60  ;;  %1421 = vmatprep.mubr.f32.mxu0 %v2260_v12  ;;  %v1452_v12 = vld [vmem:[%s2660_s14 + $0x18] sm:$0xff] }
 0x11f   : > { %1387 = vmatprep.subr.mxu0 %v1348_v61  ;;  %1535 = vmatprep.subr.mxu1 %v1458_v62  ;;  %v1706_v60 = vld [vmem:[%s2914_s12 + $0xb8] sm:$0xff]  ;;  %v1705_v62 = vld [vmem:[%s2914_s12 + $0xb0] sm:$0xff] }
 0x120   : > { %1388 = vmatpush1.msra.mxu0 %v1347_v0  ;;  %1536 = vmatpush1.msra.mxu1 %v1457_v1  ;;  %v1690_v61 = vld [vmem:[%s2914_s12 + $0x38] sm:$0xff]  ;;  %v1689_v0 = vld [vmem:[%s2914_s12 + $0x30] sm:$0xff]  ;;  %v1704_v1 = vld [vmem:[%s2914_s12 + $0xa8] sm:$0xff] }
 0x121   : > { %2039 = vmatmul.mubr.msk.f32.vlgmr.msra.gmra.mxu0 %vm824_vm1, %v2702_v44  ;;  %1537 = vmatprep.subr.mxu1 %v1456_v2  ;;  %v1512_v44 = vld [vmem:[%s2660_s14 + $0x1f8] sm:$0xff]  ;;  %v1688_v2 = vld [vmem:[%s2914_s12 + $0x28] sm:$0xff] }
 0x122   : > { %1538 = vmatpush1.msra.mxu1 %v1455_v3  ;;  %1577 = vmatprep.mubr.f32.mxu1 %v2804_v6  ;;  %v1509_v6 = vld [vmem:[%s2660_s14 + $0x1e0] sm:$0xff] }
 0x123   : > { %1539 = vmatprep.subr.mxu1 %v1454_v4  ;;  %2051 = vmatprep.subr.mxu0 %v1714_v42  ;;  %v1703_v3 = vld [vmem:[%s2914_s12 + $0xa0] sm:$0xff] }
 0x124   : > { %1540 = vmatpush1.msra.mxu1 %v1453_v5  ;;  %2052 = vmatpush3.msra.mxu0 %v1698_v43  ;;  %v1687_v4 = vld [vmem:[%s2914_s12 + $0x20] sm:$0xff]  ;;  %v1702_v5 = vld [vmem:[%s2914_s12 + $0x98] sm:$0xff] }
 0x125   : > { %1541 = vmatprep.subr.mxu1 %v1452_v12  ;;  %2053 = vmatprep.subr.mxu0 %v1713_v45  ;;  %v1686_v12 = vld [vmem:[%s2914_s12 + $0x18] sm:$0xff] }
 0x126   : > { %1542 = vmatpush1.msra.mxu1 %v1451_v7  ;;  %2054 = vmatpush3.msra.mxu0 %v1697_v46  ;;  %v1701_v7 = vld [vmem:[%s2914_s12 + $0x90] sm:$0xff] }
 0x127   : > { %1543 = vmatprep.subr.mxu1 %v1450_v9  ;;  %v1685_v9 = vld [vmem:[%s2914_s12 + $0x10] sm:$0xff] }
 0x128   : > { %1544 = vmatpush1.msra.mxu1 %v1449_v10  ;;  %v1700_v10 = vld [vmem:[%s2914_s12 + $0x88] sm:$0xff] }
 0x129   : > { %1545 = vmatprep.subr.mxu1 %v1512_v44  ;;  %v1684_v44 = vld [vmem:[%s2914_s12 + $0x8] sm:$0xff] }
 0x12a   : > { %1546 = vmatpush2.msra.mxu1 %v1511_v11  ;;  %v1699_v11 = vld [vmem:[%s2914_s12 + $0x80] sm:$0xff] }
 0x12b   : > { %1547 = vmatprep.subr.mxu1 %v1510_v13  ;;  %v1683_v13 = vld [vmem:[%s2914_s12] sm:$0xff] }
 0x12c   : > { %1548 = vmatpush2.msra.mxu1 %v1509_v6 }
 0x12d   : > { %1549 = vmatprep.subr.mxu1 %v1508_v14 }
 0x12e   : > { %1550 = vmatpush2.msra.mxu1 %v1507_v15 }
 0x12f   : > { %1551 = vmatprep.subr.mxu1 %v1506_v16  ;;  %v2261_v16 = vmov 1966171168  }
 0x130   : > { %1552 = vmatpush2.msra.mxu1 %v1505_v17  ;;  %v911_v17 = vunpack.c.l.s4 %v2261_v16 }
 0x131   : > { %1553 = vmatprep.subr.mxu1 %v1504_v18 }
 0x132   : > { %1554 = vmatpush2.msra.mxu1 %v1503_v19  ;;  %v912_v19 = vunpack.c.0.s8 %v911_v17 }
 0x133   : > { %1555 = vmatprep.subr.mxu1 %v1502_v20 }
 0x134   : > { %1556 = vmatpush2.msra.mxu1 %v1501_v21  ;;  %v915_v21 = vsub.s32 %v912_v19, %v2776_v50 }
 0x135   : > { %1557 = vmatprep.subr.mxu1 %v1500_v22 }
 0x136   : > { %1558 = vmatpush2.msra.mxu1 %v1499_v23 }
 0x137   : > { %1559 = vmatprep.subr.mxu1 %v1498_v24 }
 0x138   : > { %1560 = vmatpush2.msra.mxu1 %v1497_v25 }
 0x139   : > { %1561 = vmatprep.subr.mxu1 %v1496_v26 }
 0x13a   : > { %1562 = vmatpush2.msra.mxu1 %v1495_v27 }
 0x13b   : > { %1563 = vmatprep.subr.mxu1 %v1494_v28 }
 0x13c   : > { %1564 = vmatpush2.msra.mxu1 %v1493_v29  ;;  %v2036_v29 = vld [vmem:[%s801_s29 + $0x1] ss:$4 sm:$0x3] }
 0x13d   : > { %1565 = vmatprep.subr.mxu1 %v1492_v30 }
 0x13e   : > { %1566 = vmatpush2.msra.mxu1 %v1491_v31 }
 0x13f   : > { %1567 = vmatprep.subr.mxu1 %v1490_v32  ;;  %v906_v32 = vld [vmem:[%s801_s29] ss:$4 sm:$0x3] }
 0x140   : > { %1568 = vmatpush2.msra.mxu1 %v1489_v33 }
 0x141   : > { %1569 = vmatprep.subr.mxu1 %v1488_v34 }
 0x142   : > { %1570 = vmatpush2.msra.mxu1 %v1487_v35 }
 0x143   : > { %1571 = vmatprep.subr.mxu1 %v1486_v36  ;;  %v2040_v36 = vld [vmem:[%s801_s29 + $0x2] ss:$4 sm:$0x3] }
 0x144   : > { %1572 = vmatpush2.msra.mxu1 %v1485_v37 }
 0x145   : > { %1573 = vmatprep.subr.mxu1 %v1484_v38 }
 0x146   : > { %1574 = vmatpush2.msra.mxu1 %v1483_v39 }
 0x147   : > { %1575 = vmatprep.subr.mxu1 %v1482_v40 }
 0x148   : > { %1576 = vmatpush2.msra.mxu1 %v1481_v41 }
 0x149   : > { %1578 = vmatmul.mubr.f32.vlgmr.msra.gmra.mxu1 %v2808_v8  ;;  %v1712_v8 = vld [vmem:[%s2914_s12 + $0xe8] sm:$0xff] }
 0x14a   : > { %2055 = vmatprep.subr.mxu0 %v1712_v8 }
 0x14b   : > { %2056 = vmatpush3.msra.mxu0 %v1696_v47 }
 0x14c   : > { %2057 = vmatprep.subr.mxu0 %v1711_v48 }
 0x14d   : > { %2058 = vmatpush3.msra.mxu0 %v1695_v49 }
 0x14e   : > { %2059 = vmatprep.subr.mxu0 %v1710_v51 }
 0x14f   : > { %2060 = vmatpush3.msra.mxu0 %v1694_v52 }
 0x150   : > { %2061 = vmatprep.subr.mxu0 %v1709_v53 }
 0x151   : > { %2062 = vmatpush3.msra.mxu0 %v1693_v54 }
 0x152   : > { %2063 = vmatprep.subr.mxu0 %v1708_v55 }
 0x153   : > { %2064 = vmatpush3.msra.mxu0 %v1692_v56 }
 0x154   : > { %2065 = vmatprep.subr.mxu0 %v1707_v57 }
 0x155   : > { %2066 = vmatpush3.msra.mxu0 %v1691_v58 }
 0x156   : > { %2067 = vmatprep.subr.mxu0 %v1706_v60 }
 0x157   : > { %2068 = vmatpush3.msra.mxu0 %v1690_v61 }
 0x158   : > { %2069 = vmatprep.subr.mxu0 %v1705_v62 }
 0x159   : > { %2070 = vmatpush3.msra.mxu0 %v1689_v0 }
 0x15a   : > { %2071 = vmatprep.subr.mxu0 %v1704_v1 }
 0x15b   : > { %2072 = vmatpush3.msra.mxu0 %v1688_v2 }
 0x15c   : > { %2073 = vmatprep.subr.mxu0 %v1703_v3 }
 0x15d   : > { %2074 = vmatpush3.msra.mxu0 %v1687_v4 }
 0x15e   : > { %2075 = vmatprep.subr.mxu0 %v1702_v5 }
 0x15f   : > { %2076 = vmatpush3.msra.mxu0 %v1686_v12 }
 0x160   : > { %2077 = vmatprep.subr.mxu0 %v1701_v7 }
 0x161   : > { %2078 = vmatpush3.msra.mxu0 %v1685_v9 }
 0x162   : > { %2079 = vmatprep.subr.mxu0 %v1700_v10 }
 0x163   : > { %2080 = vmatpush3.msra.mxu0 %v1684_v44 }
 0x164   : > { %2081 = vmatprep.subr.mxu0 %v1699_v11 }
 0x165   : > { %2082 = vmatpush3.msra.mxu0 %v1683_v13 }
 0x198   : > { %v901_v6 = vpop.f32.mrf.mxu0 }
 0x19a   : > { %v903_v14 = vpop.f32.mrf.mxu0 }
 0x19b   : > { %v909_v22 = vcombine.low %v901_v6, %v903_v14 }
 0x19d   : > { %v1167_v15 = vpop.f32.mrf.mxu0  ;;  %v916_v25 = vrot.slane %v909_v22, %v915_v21 }
 0x19f   : > { %v1169_v18 = vpop.f32.mrf.mxu0  ;;  %v923_v30 = vrot.slane %v916_v25, %v915_v21 }
 0x1a0   : > { %v1176_v20 = vcombine.low %v1167_v15, %v1169_v18 }
 0x1a1   : > { %v925_v35 = vadd.f32 %v923_v30, %v906_v32 }
 0x1a2   : > { %v1183_v23 = vrot.slane %v1176_v20, %v915_v21 }
 0x1a3   : > { %v1654_v41 = vrot.slane %v925_v35, %v2787_v59  ;;  %v1650_v42 = vrot.slane %v925_v35, %v2795_v63 }
 0x1a4   : > { %v1190_v27 = vrot.slane %v1183_v23, %v915_v21 }
 0x1a6   : > { %v1192_v34 = vadd.f32 %v2036_v29, %v1190_v27 }
 0x1a8   : > { %v1665_v38 = vrot.slane %v1192_v34, %v2787_v59  ;;  %v1661_v39 = vrot.slane %v1192_v34, %v2795_v63 }
 0x1aa   : > { %v1680_v46 = vsel %vm1636_vm2, %v1654_v41, %v1665_v38  ;;  %v1679_v8 = vsel %vm1636_vm2, %v1650_v42, %v1661_v39 }
 0x1c5   : > { %v1067_v49 = vpop.f32.mrf.mxu1 }
 0x1c7   : > { %v1069_v51 = vpop.f32.mrf.mxu1 }
 0x1c8   : > { %v1074_v53 = vcombine.low %v1067_v49, %v1069_v51 }
 0x1ca   : > { %v1081_v55 = vrot.slane %v1074_v53, %v915_v21 }
 0x1cc   : > { %v1088_v58 = vrot.slane %v1081_v55, %v915_v21 }
 0x1ce   : > { %v1090_v1 = vadd.f32 %v1088_v58, %v925_v35 }
 0x1d0   : > { %v1607_v12 = vrot.slane %v1090_v1, %v2795_v63  ;;  %v1611_v7 = vrot.slane %v1090_v1, %v2787_v59 }
 0x1dd   : > { %v1323_v24 = vpop.f32.mrf.mxu0 }
 0x1df   : > { %v1325_v26 = vpop.f32.mrf.mxu0 }
 0x1e0   : > { %v1330_v52 = vcombine.low %v1323_v24, %v1325_v26 }
 0x1e1   : > { %v1423_v28 = vpop.f32.mrf.mxu0 }
 0x1e2   : > { %v1337_v54 = vrot.slane %v1330_v52, %v915_v21 }
 0x1e3   : > { %v1425_v31 = vpop.f32.mrf.mxu0 }
 0x1e4   : > { %v1432_v33 = vcombine.low %v1423_v28, %v1425_v31  ;;  %v1344_v56 = vrot.slane %v1337_v54, %v915_v21 }
 0x1e6   : > { %v1439_v50 = vrot.slane %v1432_v33, %v915_v21  ;;  %v1346_v62 = vadd.f32 %v1344_v56, %v1192_v34 }
 0x1e8   : > { %v1446_v37 = vrot.slane %v1439_v50, %v915_v21  ;;  %v1618_v3 = vrot.slane %v1346_v62, %v2795_v63  ;;  %v1622_v4 = vrot.slane %v1346_v62, %v2787_v59 }
 0x1ea   : > { %v1448_v40 = vadd.f32 %v2040_v36, %v1446_v37  ;;  %v1637_v44 = vsel %vm1636_vm2, %v1607_v12, %v1618_v3  ;;  %v1638_v11 = vsel %vm1636_vm2, %v1611_v7, %v1622_v4 }
 0x1ec   : > { %v1676_v43 = vrot.slane %v1448_v40, %v2787_v59  ;;  %v1672_v45 = vrot.slane %v1448_v40, %v2795_v63 }
 0x1ee   : > { %v1682_v47 = vsel %vm828_vm0, %v1680_v46, %v1676_v43  ;;  %v1681_v48 = vsel %vm828_vm0, %v1679_v8, %v1672_v45 }
 0x1ef   : > { %1779 = vmatprep.mubr.f32.mxu0 %v1682_v47 }
 0x1f0   : > { %1780 = vmatmul.mubr.f32.vlgmr.msra.gmra.mxu0 %v1681_v48 }
 0x209   : > { %v1579_v57 = vpop.f32.mrf.mxu1 }
 0x20b   : > { %v1581_v60 = vpop.f32.mrf.mxu1 }
 0x20c   : > { %v1586_v61 = vcombine.low %v1579_v57, %v1581_v60 }
 0x20e   : > { %v1593_v0 = vrot.slane %v1586_v61, %v915_v21 }
 0x210   : > { %v1600_v2 = vrot.slane %v1593_v0, %v915_v21 }
 0x212   : > { %v1602_v5 = vadd.f32 %v1600_v2, %v1448_v40 }
 0x214   : > { %v1629_v9 = vrot.slane %v1602_v5, %v2795_v63  ;;  %v1633_v10 = vrot.slane %v1602_v5, %v2787_v59 }
 0x216   : > { %v1639_v13 = vsel %vm828_vm0, %v1637_v44, %v1629_v9  ;;  %v1640_v6 = vsel %vm828_vm0, %v1638_v11, %v1633_v10 }
 0x217   : > { %v1643_v14 = vcombine.low %v1639_v13, %v1640_v6 }
 0x219   : > { %1645 = vst [vmem:[%s814_s13] sm:$0x77] %v1643_v14 }
 0x2af   : > { %1788 = sbr.rel (%p2041_p6) target bundleno = 694 (0x2b6), region = 168 }
 0x2b0   : > { %v2083_v15 = vpop.f32.mrf.mxu0 }
 0x2b2   : > { %v2084_v16 = vpop.f32.mrf.mxu0 }
 0x2b3   : > { %v2085_v63 = vadd.f32 %v2084_v16, %v2083_v15 }
 0x2b4   : > { %v2262_v59 = vmov 0.0  }
 0x2b5   : > { %1789 = vst [vmem:[%s3017_s11] sm:$0x7] %v2262_v59 }
 0x2b6 PF:  {}
 0x2bc   : > { %v1790_v17 = vld [vmem:[%s3017_s11] sm:$0x7] }
 0x2bd   : > { %v1791_v18 = vadd.f32 %v2085_v63, %v1790_v17 }
 0x2bf   : > { %1792 = vst [vmem:[%s3017_s11] sm:$0x7] %v1791_v18 }
 0x2c0 PF: > { %s3033_s21 = sld [smem:[#allocation13_spill]]  ;;  %p25_p3 = scmp.ge.s32.totalorder %s2345_s22, 4  }
 0x2c1   : > { %s3034_s17 = smov %s2242_s18  ;;  %s3035_s18 = smov %s2246_s19 }
 0x2c2   : > { %s3037_s20 = smov %s2345_s22  ;;  %27 = sbr.rel (!%p25_p3) target bundleno = 11 (0xb), region = 265 }
 0x2c6   : > { %s3036_s19 = smov %s3033_s21 }
 0x2c7   :  { %1821 = vsyncpa [#allocation7], 1 }
 0x2c8   :  { %1823 = vsyncpa [#allocation7 + $0x1], 1 }
 0x2c9   :  { %1824 = vsyncpa [#allocation9], 1 }
 0x2ca   :  { %1826 = vsyncpa [#allocation9 + $0x1], 1 }

// kernel: fit_shape_forward.3
= control target key start
LH: loop header
LB: loop body
LE: loop exit
PB: predicated region body
PF: predicated region fallthrough
CT: control target
= control target key end

     0   :  { %s608_s12 = smov 0   ;;  %s610_s13 = smov 0   ;;  %s676_s0 = inlined_call_operand.vmem [shape: f32[16,24], index: 0, kind: input, shape index: {}]   ;;  %s677_s1 = inlined_call_operand.vmem [shape: f32[24,512], index: 1, kind: input, shape index: {}]   ;;  %s678_s2 = inlined_call_operand.vmem [shape: f32[3,512], index: 2, kind: input, shape index: {}]   ;;  %s679_s3 = inlined_call_operand.vmem [shape: f32[3,512], index: 3, kind: output, shape index: {}]  }
   0x1   :  { %s612_s14 = smov 0  }
   0x2 LB: > { %s512_s15 = sadd.s32 4294967295, %s585_s14   ;;  %s625_s16 = sadd.s32 1, %s585_s14   ;;  %s585_s14 = sphi %s612_s14, %s682_s14   ;;  %s581_s13 = sphi %s610_s13, %s681_s13   ;;  %s577_s12 = sphi %s608_s12, %s680_s12  }
   0x3   : > { %s38_s17 = ssub.s32 %s585_s14, %s625_s16  ;;  %s41_s18 = sadd.s32 1, %s581_s13 }
   0x4   : > { %p39_p0 = scmp.eq.s32.totalorder %s38_s17, 0  ;;  %p48_p1 = scmp.ne.s32.totalorder %s581_s13, %s577_s12 }
   0x5   : > { %p49_p2 = scmp.eq.s32.totalorder %s585_s14, 0  ;;  %p515_p4 = scmp.ge.s32.totalorder %s585_s14, 2 }
   0x6   : > { %s634_s19 = scalar_select %p39_p0, %s581_s13, %s41_s18  }
   0x7   : > { %p50_p3 = por %p49_p2, %p48_p1  ;;  %129 = sbr.rel (%p515_p4) target bundleno = 19 (0x13), region = 20 }
   0xc   : > { %132 = sbr.rel (!%p50_p3) target bundleno = 19 (0x13), region = 24  ;;  %s134_s20 = sand.u32 (%p50_p3), 1, %s581_s13  }
   0xd   : > { %s529_s21 = sshll.u32 (%p50_p3), %s585_s14, 4  ;;  %s536_s22 = smul.u32 (%p50_p3), 48, %s134_s20 }
   0xe   : > { %s139_s25 = scalar_lea.vmem (%p50_p3), %s677_s1, %s529_s21 }
   0xf   : > { %v152_v0 = vld [vmem:[%s139_s25] sm:$0xff] (%p50_p3)  ;;  %v154_v1 = vld [vmem:[%s139_s25 + $0x8] sm:$0xff] (%p50_p3)  ;;  %s136_s26 = scalar_lea.vmem (%p50_p3), [#allocation2], %s536_s22 }
  0x10   : > { %v156_v2 = vld [vmem:[%s139_s25 + $0x20] sm:$0xff] (%p50_p3)  ;;  %v158_v3 = vld [vmem:[%s139_s25 + $0x28] sm:$0xff] (%p50_p3)  ;;  %153 = vst [vmem:[%s136_s26] sm:$0xff] (%p50_p3), %v152_v0  ;;  %155 = vst [vmem:[%s136_s26 + $0x8] sm:$0xff] (%p50_p3), %v154_v1 }
  0x11   : > { %v160_v4 = vld [vmem:[%s139_s25 + $0x40] sm:$0xff]  ;;  %v162_v5 = vld [vmem:[%s139_s25 + $0x48] sm:$0xff]  ;;  %157 = vst [vmem:[%s136_s26 + $0x10] sm:$0xff] %v156_v2  ;;  %159 = vst [vmem:[%s136_s26 + $0x18] sm:$0xff] %v158_v3 }
  0x12   : > { %161 = vst [vmem:[%s136_s26 + $0x20] sm:$0xff] %v160_v4  ;;  %163 = vst [vmem:[%s136_s26 + $0x28] sm:$0xff] %v162_v5 }
  0x13 PF: > { %p518_p5 = scmp.ge.s32.totalorder %s585_s14, 1  ;;  %p177_p6 = scmp.lt.s32.totalorder %s585_s14, 3 }
  0x15   : > { %p178_p7 = pnand %p518_p5, %p177_p6 }
  0x16   : > { %s184_s27 = sand.u32 (!%p178_p7), 1, %s577_s12   ;;  %s519_s7 = sshll.u32 (!%p178_p7), %s512_s15, 1 }
  0x17   : > { %181 = sbr.rel (%p178_p7) target bundleno = 248 (0xf8), region = 51  ;;  %p214_p8 = scmp.lt.s32.totalorder (!%p178_p7), %s519_s7, 3 }
  0x18   : > { %s537_s28 = smul.u32 (!%p178_p7), 48, %s184_s27 }
  0x1a   : > { %s186_s29 = scalar_lea.vmem (!%p178_p7), [#allocation2], %s537_s28 }
  0x1c   : > { %v587_v6 = vmov 0.0   ;;  %v232_v7 = vld [vmem:[%s186_s29 + $0x28] sm:$0xff]  ;;  %v231_v8 = vld [vmem:[%s186_s29 + $0x20] sm:$0xff]  ;;  %v230_v9 = vld [vmem:[%s186_s29 + $0x18] sm:$0xff]  ;;  %vm233_vm0 = vcmask 195584   ;;  %s684_s7 = smov (!%p214_p8, %s519_s7), 3  ;;  %v323_v15 = vlaneseq }
  0x1d   : > { %304 = vmatprep.mubr.f32.mxu0 %v587_v6  ;;  %310 = vmatprep.mubr.f32.mxu1 %v587_v6  ;;  %v229_v10 = vld [vmem:[%s186_s29 + $0x10] sm:$0xff]  ;;  %v228_v11 = vld [vmem:[%s186_s29 + $0x8] sm:$0xff]  ;;  %v227_v12 = vld [vmem:[%s186_s29] sm:$0xff]  ;;  %s520_s8 = sshll.u32 %s684_s7, 2  ;;  %vm427_vm1 = vcmask 1040384   ;;  %vm430_vm2 = vcmask 1041408  }
  0x1e   : > { %266 = vmatprep.subr.mxu0 %v232_v7  ;;  %530 = vmatprep.subr.mxu1 %v232_v7  ;;  %v225_v13 = vld [vmem:[%s676_s0] sm:$0xff]  ;;  %v226_v14 = vld [vmem:[%s676_s0 + $0x8] sm:$0xff]  ;;  %v324_v16 = vshrl.u32 %v323_v15, 7  ;;  %s217_s11 = scalar_lea.vmem %s678_s2, %s520_s8  ;;  %s223_s15 = scalar_lea.vmem %s679_s3, %s520_s8 }
  0x1f   : > { %267 = vmatpush1.msra.mxu0 %v231_v8  ;;  %533 = vmatpush1.msra.mxu1 %v231_v8  ;;  %v525_v18 = vld [vmem:[%s217_s11 + $0x1] ss:$4 sm:$0x3]  ;;  %v526_v19 = vld [vmem:[%s217_s11 + $0x2] ss:$4 sm:$0x3] }
  0x20   : > { %268 = vmatprep.subr.mxu0 %v230_v9  ;;  %531 = vmatprep.subr.mxu1 %v230_v9  ;;  %v325_v17 = vsub.s32 0, %v324_v16  ;;  %v317_v20 = vld [vmem:[%s217_s11] ss:$4 sm:$0x3]  ;;  %v329_v21 = vsub.s32 1, %v324_v16 }
  0x21   : > { %269 = vmatpush1.msra.mxu0 %v229_v10  ;;  %534 = vmatpush1.msra.mxu1 %v229_v10 }
  0x22   : > { %270 = vmatprep.subr.mxu0 %v228_v11  ;;  %532 = vmatprep.subr.mxu1 %v228_v11  ;;  %v339_v22 = vrot.slane %v525_v18, %v325_v17  ;;  %v360_v23 = vrot.slane %v526_v19, %v325_v17  ;;  %v326_v24 = vrot.slane %v317_v20, %v325_v17 }
  0x23   : > { %271 = vmatpush1.msra.mxu0 %v227_v12  ;;  %535 = vmatpush1.msra.mxu1 %v227_v12  ;;  %v343_v25 = vrot.slane %v525_v18, %v329_v21  ;;  %v364_v28 = vrot.slane %v526_v19, %v329_v21  ;;  %v330_v31 = vrot.slane %v317_v20, %v329_v21 }
  0x24   : > { %523 = vmatmul.mubr.msk.f32.vlgmr.msra.gmra.mxu0 %vm233_vm0, %v225_v13  ;;  %524 = vmatmul.mubr.msk.f32.vlgmr.msra.gmra.mxu1 %vm233_vm0, %v226_v14 }
  0xe4   : > { %v306_v26 = vpop.f32.mrf.mxu0  ;;  %v312_v27 = vpop.f32.mrf.mxu1 }
  0xe5   : > { %v346_v29 = vmul.f32 %v339_v22, %v306_v26  ;;  %v367_v30 = vmul.f32 %v360_v23, %v306_v26  ;;  %v385_v32 = vmul.f32 %v326_v24, %v312_v27  ;;  %v387_v33 = vmul.f32 %v339_v22, %v312_v27 }
  0xe6   : > { %v397_v34 = vmul.f32 %v360_v23, %v312_v27  ;;  %v308_v35 = vpop.f32.mrf.mxu0  ;;  %v314_v36 = vpop.f32.mrf.mxu1  ;;  %v333_v37 = vmul.f32 %v326_v24, %v306_v26  ;;  %v379_v48 = vrot.slane %v306_v26, 3  ;;  %v409_v57 = vrot.slane %v312_v27, 3 }
  0xe7   : > { %v350_v38 = vrot.slane %v346_v29, 1  ;;  %v347_v39 = vmul.f32 %v343_v25, %v308_v35  ;;  %v371_v40 = vrot.slane %v367_v30, 2  ;;  %v391_v41 = vrot.slane %v387_v33, 1 }
  0xe8   : > { %v401_v42 = vrot.slane %v397_v34, 2  ;;  %v368_v43 = vmul.f32 %v364_v28, %v308_v35  ;;  %v334_v45 = vmul.f32 %v330_v31, %v308_v35  ;;  %v388_v47 = vmul.f32 %v343_v25, %v314_v36 }
  0xe9   : > { %v354_v44 = vadd.f32 %v350_v38, %v333_v37  ;;  %v351_v46 = vrot.slane %v347_v39, 1  ;;  %v395_v49 = vadd.f32 %v391_v41, %v385_v32  ;;  %v386_v50 = vmul.f32 %v330_v31, %v314_v36 }
  0xea   : > { %v398_v51 = vmul.f32 %v364_v28, %v314_v36  ;;  %v372_v54 = vrot.slane %v368_v43, 2  ;;  %v392_v55 = vrot.slane %v388_v47, 1  ;;  %v380_v58 = vrot.slane %v308_v35, 3 }
  0xeb   : > { %v375_v52 = vadd.f32 %v371_v40, %v354_v44  ;;  %v355_v53 = vadd.f32 %v351_v46, %v334_v45  ;;  %v405_v56 = vadd.f32 %v401_v42, %v395_v49  ;;  %v410_v3 = vrot.slane %v314_v36, 3 }
  0xec   : > { %v396_v61 = vadd.f32 %v392_v55, %v386_v50  ;;  %v402_v62 = vrot.slane %v398_v51, 2 }
  0xed   : > { %v383_v59 = vadd.f32 %v379_v48, %v375_v52  ;;  %v376_v60 = vadd.f32 %v372_v54, %v355_v53  ;;  %v413_v63 = vadd.f32 %v409_v57, %v405_v56 }
  0xee   : > { %v406_v2 = vadd.f32 %v402_v62, %v396_v61 }
  0xef   : > { %v417_v0 = vrot.slane %v383_v59, 3  ;;  %v384_v1 = vadd.f32 %v380_v58, %v376_v60  ;;  %v423_v4 = vrot.slane %v413_v63, 6 }
  0xf0   : > { %v414_v6 = vadd.f32 %v410_v3, %v406_v2 }
  0xf1   : > { %v418_v5 = vrot.slane %v384_v1, 3  ;;  %v428_v7 = vsel %vm427_vm1, %v383_v59, %v417_v0 }
  0xf2   : > { %v424_v9 = vrot.slane %v414_v6, 6  ;;  %v431_v10 = vsel %vm430_vm2, %v428_v7, %v423_v4 }
  0xf3   : > { %v429_v8 = vsel %vm427_vm1, %v384_v1, %v418_v5 }
  0xf4   : > { %v432_v11 = vsel %vm430_vm2, %v429_v8, %v424_v9 }
  0xf5   : > { %v435_v12 = vcombine.low %v431_v10, %v432_v11 }
  0xf7   : > { %437 = vst [vmem:[%s223_s15] sm:$0x77] %v435_v12 }
  0xf8 PF: > { %p10_p9 = scmp.ge.s32.totalorder %s625_s16, 4   ;;  %s680_s12 = smov %s581_s13 }
  0xf9   : > { %s681_s13 = smov %s634_s19  ;;  %s682_s14 = smov %s625_s16 }
  0xfa   :  { %12 = sbr.rel (!%p10_p9) target bundleno = 2 (0x2), region = 95 }

</bundles_post_ra>
